<compile_context>
chip_gen: v6e
topology: v6e:2x2x1
jax: 0.10.0
libtpu: 0.0.40
codegen_flags: <defaults>
</compile_context>

<pallas_src>
import math
import functools

import jax
import jax.numpy as jnp
from jax.experimental import pallas as pl
from jax.experimental.pallas import tpu as pltpu


# ------------------------------ kernel helpers -------------------------------


def _layernorm(x, g, b, eps):
    mu = jnp.mean(x, axis=-1, keepdims=True)
    var = jnp.mean((x - mu) ** 2, axis=-1, keepdims=True)
    return (x - mu) * jax.lax.rsqrt(var + eps) * g + b


def _split_heads(x2d, B, S, nh, hd):
    # (B*S, nh*hd) -> (B*nh, S, hd), leading index = b*nh + h.
    # Static row/lane slices + leading-axis concat only (no lane-splitting
    # reshapes / major<->minor transposes, which Mosaic may reject).
    pieces = []
    for b in range(B):
        for h in range(nh):
            pieces.append(x2d[b * S:(b + 1) * S, h * hd:(h + 1) * hd][None, :, :])
    return jnp.concatenate(pieces, axis=0)


def _merge_heads(x3d, B, S, nh, hd):
    # (B*nh, S, hd) -> (B*S, nh*hd); inverse of _split_heads.
    rows = []
    for b in range(B):
        cols = [x3d[b * nh + h] for h in range(nh)]
        rows.append(jnp.concatenate(cols, axis=-1))          # (S, H)
    return jnp.concatenate(rows, axis=0)                      # (B*S, H)


# --------------------------------- kernel ------------------------------------


def fused_llama_kernel(hs_ref, cq_ref, sq_ref, ck_ref, sk_ref,
                       ln1g_ref, ln1b_ref, wqkv_ref, wo_ref,
                       ln2g_ref, ln2b_ref, wgu_ref, wd_ref,
                       fng_ref, fnb_ref,
                       out_ref, x_scr,
                       *, B, S, num_heads, head_dim, hidden, inter, eps):
    l = pl.program_id(0)
    num_layers = pl.num_programs(0)
    H = hidden
    nh, hd = num_heads, head_dim

    # Load the model input into the resident VMEM hidden state on layer 0.
    @pl.when(l == 0)
    def _():
        x_scr[...] = hs_ref[...].astype(jnp.float32)

    x = x_scr[...]                                             # (T, H) f32

    # ---- input LayerNorm (f32) ----
    h = _layernorm(x, ln1g_ref[...], ln1b_ref[...], eps)

    # ---- fused, lane-dense QKV (+ pre-rotated q/k) projection ----
    # columns: [ q | q_rot | k | k_rot | v ], each H wide.
    qkv = jnp.dot(h.astype(jnp.bfloat16), wqkv_ref[...],
                  preferred_element_type=jnp.float32)          # (T, 5H) f32

    # RoPE as two FMAs; rotate_half permutation/sign live in the weights,
    # 1/sqrt(hd) scale lives in the q tables.
    q = qkv[:, 0 * H:1 * H] * cq_ref[...] + qkv[:, 1 * H:2 * H] * sq_ref[...]
    k = qkv[:, 2 * H:3 * H] * ck_ref[...] + qkv[:, 3 * H:4 * H] * sk_ref[...]
    v = qkv[:, 4 * H:5 * H]

    # ---- attention, batched over (batch * heads) ----
    q_h = _split_heads(q, B, S, nh, hd).astype(jnp.bfloat16)   # (B*nh, S, hd)
    k_h = _split_heads(k, B, S, nh, hd).astype(jnp.bfloat16)
    v_h = _split_heads(v, B, S, nh, hd).astype(jnp.bfloat16)

    s = jnp.einsum('bqd,bkd->bqk', q_h, k_h,
                   preferred_element_type=jnp.float32)         # (B*nh, S, S)
    s = s - jnp.max(s, axis=-1, keepdims=True)
    p = jnp.exp(s)
    p = p * pl.reciprocal(jnp.sum(p, axis=-1, keepdims=True), approx=True)
    o = jnp.einsum('bqk,bkd->bqd', p.astype(jnp.bfloat16), v_h,
                   preferred_element_type=jnp.float32)         # (B*nh, S, hd)

    # ---- O projection: single (T, H) @ (H, H) matmul ----
    attn2d = _merge_heads(o, B, S, nh, hd)                     # (T, H) f32
    attn = jnp.dot(attn2d.astype(jnp.bfloat16), wo_ref[...],
                   preferred_element_type=jnp.float32)         # (T, H)

    # ---- residual + post-attn LayerNorm + fused SwiGLU MLP + residual ----
    x = x + attn
    h2 = _layernorm(x, ln2g_ref[...], ln2b_ref[...], eps)
    gu = jnp.dot(h2.astype(jnp.bfloat16), wgu_ref[...],
                 preferred_element_type=jnp.float32)           # (T, 2I)
    gate = gu[:, :inter]
    up = gu[:, inter:]
    act = gate * jax.nn.sigmoid(gate)                          # SiLU (f32)
    mlp = jnp.dot((act * up).astype(jnp.bfloat16), wd_ref[...],
                  preferred_element_type=jnp.float32)          # (T, H)
    y = x + mlp

    # Carry hidden state to the next layer in VMEM (no HBM round trip).
    x_scr[...] = y

    # ---- fused final model LayerNorm + single output store (last layer) ----
    @pl.when(l == num_layers - 1)
    def _():
        out_ref[...] = _layernorm(y, fng_ref[...], fnb_ref[...],
                                  eps).astype(out_ref.dtype)


# ------------------------------ weight packing --------------------------------


def rotary_tables(seq_len, head_dim, base=10000.0):
    inv_freq = 1.0 / (base ** (jnp.arange(0, head_dim, 2, dtype=jnp.float32) / head_dim))
    t = jnp.arange(seq_len, dtype=jnp.float32)
    freqs = t[:, None] * inv_freq[None, :]
    emb = jnp.concatenate([freqs, freqs], axis=-1)
    return jnp.cos(emb), jnp.sin(emb)


def _rotate_half_columns(w, num_heads, head_dim):
    """Return w_rot such that x @ w_rot == rotate_half_per_head(x @ w)."""
    h_in = w.shape[0]
    half = head_dim // 2
    w3 = w.reshape(h_in, num_heads, head_dim)
    w_rot = jnp.concatenate([-w3[:, :, half:], w3[:, :, :half]], axis=-1)
    return w_rot.reshape(h_in, num_heads * head_dim)


def pack_model_params(layer_params_raw, norm_g, norm_b, *, num_heads, head_dim):
    ln1g, ln1b, ln2g, ln2b = [], [], [], []
    wqkv, wo_l, wgu, wd_l = [], [], [], []
    for (l1g, l1b, wq, wk, wv, wo, l2g, l2b, wg, wu, wd) in layer_params_raw:
        wq_r = _rotate_half_columns(wq, num_heads, head_dim)
        wk_r = _rotate_half_columns(wk, num_heads, head_dim)
        wqkv.append(jnp.concatenate([wq, wq_r, wk, wk_r, wv],
                                    axis=1).astype(jnp.bfloat16))    # (H, 5H)
        wo_l.append(wo.astype(jnp.bfloat16))                          # (H, H)
        wgu.append(jnp.concatenate([wg, wu], axis=1).astype(jnp.bfloat16))  # (H, 2I)
        wd_l.append(wd.astype(jnp.bfloat16))                          # (I, H)
        ln1g.append(l1g.reshape(1, -1)); ln1b.append(l1b.reshape(1, -1))
        ln2g.append(l2g.reshape(1, -1)); ln2b.append(l2b.reshape(1, -1))
    stack = lambda xs: jnp.stack(xs, axis=0)
    return dict(ln1_g=stack(ln1g), ln1_b=stack(ln1b),
                wqkv=stack(wqkv), wo=stack(wo_l),
                ln2_g=stack(ln2g), ln2_b=stack(ln2b),
                wgu=stack(wgu), wd=stack(wd_l),
                norm_g=norm_g.reshape(1, -1).astype(jnp.float32),
                norm_b=norm_b.reshape(1, -1).astype(jnp.float32))


# --------------------------------- wrapper ------------------------------------


def _invariant_spec(shape):
    nd = len(shape)
    return pl.BlockSpec(tuple(shape), lambda l, _nd=nd: (0,) * _nd)


def _layer_spec(per_layer_shape):
    nd = len(per_layer_shape)
    return pl.BlockSpec((None,) + tuple(per_layer_shape),
                        lambda l, _nd=nd: (l,) + (0,) * _nd)


def llama_model(hs, layer_params_raw, norm_g, norm_b, *, num_heads, head_dim,
                inter, eps=1e-5):
    B, S, H = hs.shape
    assert H == num_heads * head_dim
    L = len(layer_params_raw)
    T = B * S

    packed = pack_model_params(layer_params_raw, norm_g, norm_b,
                               num_heads=num_heads, head_dim=head_dim)

    # RoPE tables tiled across heads and batch; score scale folded into the
    # q tables; rotate_half sign/permutation already folded into the weights.
    cos_emb, sin_emb = rotary_tables(S, head_dim)
    cos_t = jnp.tile(cos_emb, (B, num_heads))                  # (T, H)
    sin_t = jnp.tile(sin_emb, (B, num_heads))                  # (T, H)
    scale = 1.0 / math.sqrt(head_dim)
    cq, sq = cos_t * scale, sin_t * scale
    ck, sk = cos_t, sin_t

    hs2d = hs.reshape(T, H)

    invariant_arrays = [hs2d, cq, sq, ck, sk]
    layer_arrays = [packed['ln1_g'], packed['ln1_b'], packed['wqkv'],
                    packed['wo'], packed['ln2_g'], packed['ln2_b'],
                    packed['wgu'], packed['wd']]
    final_arrays = [packed['norm_g'], packed['norm_b']]

    in_specs = ([_invariant_spec(a.shape) for a in invariant_arrays]
                + [_layer_spec(a.shape[1:]) for a in layer_arrays]
                + [_invariant_spec(a.shape) for a in final_arrays])

    kern = functools.partial(fused_llama_kernel, B=B, S=S, num_heads=num_heads,
                             head_dim=head_dim, hidden=H, inter=inter, eps=eps)

    out2d = pl.pallas_call(
        kern,
        out_shape=jax.ShapeDtypeStruct((T, H), hs.dtype),
        grid=(L,),
        in_specs=in_specs,
        out_specs=pl.BlockSpec((T, H), lambda l: (0, 0)),
        scratch_shapes=[pltpu.VMEM((T, H), jnp.float32)],
        compiler_params=pltpu.CompilerParams(
            dimension_semantics=("arbitrary",)),   # layers are sequential
    )(*invariant_arrays, *layer_arrays, *final_arrays)
    return out2d.reshape(B, S, H)


# ----------------------------- pure-JAX reference ------------------------------


def _ref_layer(x, cos, sin, params, num_heads, head_dim, eps=1e-5):
    (ln1_g, ln1_b, wq, wk, wv, wo, ln2_g, ln2_b, wg, wu, wd) = params

    def ln(y, g, b):
        mu = y.mean(-1, keepdims=True)
        var = ((y - mu) ** 2).mean(-1, keepdims=True)
        return (y - mu) / jnp.sqrt(var + eps) * g.reshape(-1) + b.reshape(-1)

    B, S, H = x.shape
    h = ln(x, ln1_g, ln1_b)

    def split(y):
        return y.reshape(B, S, num_heads, head_dim).transpose(0, 2, 1, 3)

    q, k, v = split(h @ wq), split(h @ wk), split(h @ wv)

    def rope(t):
        t1 = t[..., :head_dim // 2]
        t2 = t[..., head_dim // 2:]
        rot = jnp.concatenate([-t2, t1], axis=-1)
        return t * cos[None, None] + rot * sin[None, None]

    q, k = rope(q), rope(k)
    s = jnp.einsum('bhqd,bhkd->bhqk', q, k) / math.sqrt(head_dim)
    p = jax.nn.softmax(s, axis=-1)
    o = jnp.einsum('bhqk,bhkd->bhqd', p, v).transpose(0, 2, 1, 3).reshape(B, S, H)
    x = x + o @ wo
    h2 = ln(x, ln2_g, ln2_b)
    return x + (jax.nn.silu(h2 @ wg) * (h2 @ wu)) @ wd


def _ref_model(hs, layer_params, norm_g, norm_b, num_heads, head_dim, eps=1e-5):
    S = hs.shape[1]
    cos, sin = rotary_tables(S, head_dim)
    for params in layer_params:
        hs = _ref_layer(hs, cos, sin, params, num_heads, head_dim, eps)
    mu = hs.mean(-1, keepdims=True)
    var = ((hs - mu) ** 2).mean(-1, keepdims=True)
    return (hs - mu) / jnp.sqrt(var + eps) * norm_g.reshape(-1) + norm_b.reshape(-1)


# ----------------------------------- main --------------------------------------


if __name__ == "__main__":
    # config (small, consistent with the module): hidden=32, heads=4, inter=64, layers=2
    B, S, H = 2, 8, 32
    NUM_HEADS = 4
    HEAD_DIM = H // NUM_HEADS
    INTER = 64
    NUM_LAYERS = 2

    key = jax.random.PRNGKey(0)
    key, xk = jax.random.split(key)
    hidden_states = jax.random.normal(xk, (B, S, H), dtype=jnp.float32)

    def bf16_round(w):
        # Weights are stored in bf16 for the kernel; round the reference weights
        # identically so both paths use the exact same weight values.
        return w.astype(jnp.bfloat16).astype(jnp.float32)

    def make_layer_params(k):
        ks = jax.random.split(k, 7)
        scale = 0.08
        ln1_g = jnp.ones((1, H), jnp.float32)
        ln1_b = jnp.zeros((1, H), jnp.float32)
        wq = bf16_round(scale * jax.random.normal(ks[0], (H, H), jnp.float32))
        wk = bf16_round(scale * jax.random.normal(ks[1], (H, H), jnp.float32))
        wv = bf16_round(scale * jax.random.normal(ks[2], (H, H), jnp.float32))
        wo = bf16_round(scale * jax.random.normal(ks[3], (H, H), jnp.float32))
        ln2_g = jnp.ones((1, H), jnp.float32)
        ln2_b = jnp.zeros((1, H), jnp.float32)
        wg = bf16_round(scale * jax.random.normal(ks[4], (H, INTER), jnp.float32))
        wu = bf16_round(scale * jax.random.normal(ks[5], (H, INTER), jnp.float32))
        wd = bf16_round(scale * jax.random.normal(ks[6], (INTER, H), jnp.float32))
        return (ln1_g, ln1_b, wq, wk, wv, wo, ln2_g, ln2_b, wg, wu, wd)

    layer_params = []
    for _ in range(NUM_LAYERS):
        key, lk = jax.random.split(key)
        layer_params.append(make_layer_params(lk))

    norm_g = jnp.ones((1, H), jnp.float32)
    norm_b = jnp.zeros((1, H), jnp.float32)

    out = llama_model(hidden_states, layer_params, norm_g, norm_b,
                      num_heads=NUM_HEADS, head_dim=HEAD_DIM, inter=INTER)
    out = jax.block_until_ready(out)

    ref = _ref_model(hidden_states, layer_params, norm_g, norm_b, NUM_HEADS, HEAD_DIM)
    assert out.shape == (B, S, H)
    err = float(jnp.max(jnp.abs(out - ref)))
    # NOTE: kernel casts activations to bf16 at every MXU boundary and uses an
    # approximate reciprocal in softmax; the f32 reference therefore matches
    # only to a loosened tolerance (intentional, documented).
    assert jnp.allclose(out, ref, atol=5e-2, rtol=5e-2), err

    print("KERNEL_OK")
</pallas_src>

<mosaic_0001>
module attributes {stable_mosaic.version = 11 : i64} {
  func.func @fused_llama_kernel(%arg0: i32, %arg1: memref<16x32xf32, #tpu.memory_space<vmem>>, %arg2: memref<16x32xf32, #tpu.memory_space<vmem>>, %arg3: memref<16x32xf32, #tpu.memory_space<vmem>>, %arg4: memref<16x32xf32, #tpu.memory_space<vmem>>, %arg5: memref<16x32xf32, #tpu.memory_space<vmem>>, %arg6: memref<1x1x32xf32, #tpu.memory_space<vmem>>, %arg7: memref<1x1x32xf32, #tpu.memory_space<vmem>>, %arg8: memref<1x32x160xbf16, #tpu.memory_space<vmem>>, %arg9: memref<1x32x32xbf16, #tpu.memory_space<vmem>>, %arg10: memref<1x1x32xf32, #tpu.memory_space<vmem>>, %arg11: memref<1x1x32xf32, #tpu.memory_space<vmem>>, %arg12: memref<1x32x128xbf16, #tpu.memory_space<vmem>>, %arg13: memref<1x64x32xbf16, #tpu.memory_space<vmem>>, %arg14: memref<1x32xf32, #tpu.memory_space<vmem>>, %arg15: memref<1x32xf32, #tpu.memory_space<vmem>>, %arg16: memref<16x32xf32, #tpu.memory_space<vmem>>, %arg17: memref<16x32xf32, #tpu.memory_space<vmem>>) attributes {dimension_semantics = [#tpu.dimension_semantics<arbitrary>], iteration_bounds = array<i64: 2>, scalar_prefetch = 0 : i64, scratch_operands = 1 : i64, tpu.core_type = #tpu.core_type<tc>, window_params = [{pipeline_mode = #tpu.pipeline_mode<synchronous>, transform_indices = @transform_0, window_bounds = array<i64: 16, 32>}, {pipeline_mode = #tpu.pipeline_mode<synchronous>, transform_indices = @transform_1, window_bounds = array<i64: 16, 32>}, {pipeline_mode = #tpu.pipeline_mode<synchronous>, transform_indices = @transform_2, window_bounds = array<i64: 16, 32>}, {pipeline_mode = #tpu.pipeline_mode<synchronous>, transform_indices = @transform_3, window_bounds = array<i64: 16, 32>}, {pipeline_mode = #tpu.pipeline_mode<synchronous>, transform_indices = @transform_4, window_bounds = array<i64: 16, 32>}, {transform_indices = @transform_5, window_bounds = array<i64: 1, 1, 32>}, {transform_indices = @transform_6, window_bounds = array<i64: 1, 1, 32>}, {transform_indices = @transform_7, window_bounds = array<i64: 1, 32, 160>}, {transform_indices = @transform_8, window_bounds = array<i64: 1, 32, 32>}, {transform_indices = @transform_9, window_bounds = array<i64: 1, 1, 32>}, {transform_indices = @transform_10, window_bounds = array<i64: 1, 1, 32>}, {transform_indices = @transform_11, window_bounds = array<i64: 1, 32, 128>}, {transform_indices = @transform_12, window_bounds = array<i64: 1, 64, 32>}, {pipeline_mode = #tpu.pipeline_mode<synchronous>, transform_indices = @transform_13, window_bounds = array<i64: 1, 32>}, {pipeline_mode = #tpu.pipeline_mode<synchronous>, transform_indices = @transform_14, window_bounds = array<i64: 1, 32>}, {pipeline_mode = #tpu.pipeline_mode<synchronous>, transform_indices = @transform_15, window_bounds = array<i64: 16, 32>}]} {
    %c0_i32 = arith.constant 0 : i32
    %0 = arith.cmpi eq, %arg0, %c0_i32 : i32
    %1 = arith.extui %0 : i1 to i32
    %c0_i32_0 = arith.constant 0 : i32
    %2 = arith.cmpi ne, %1, %c0_i32_0 : i32
    scf.if %2 {
      %c0_55 = arith.constant 0 : index
      %c0_56 = arith.constant 0 : index
      %188 = vector.load %arg1[%c0_55, %c0_56] : memref<16x32xf32, #tpu.memory_space<vmem>>, vector<16x32xf32>
      %c0_57 = arith.constant 0 : index
      %c0_58 = arith.constant 0 : index
      %189 = vector.load %arg17[%c0_57, %c0_58] : memref<16x32xf32, #tpu.memory_space<vmem>>, vector<16x32xf32>
      tpu.vector_store %arg17[%c0_57, %c0_58], %188 {strides = array<i32>} : memref<16x32xf32, #tpu.memory_space<vmem>>, vector<16x32xf32>,
    } else {
    }
    %c0 = arith.constant 0 : index
    %c0_1 = arith.constant 0 : index
    %3 = vector.load %arg17[%c0, %c0_1] : memref<16x32xf32, #tpu.memory_space<vmem>>, vector<16x32xf32>
    %c0_2 = arith.constant 0 : index
    %c0_3 = arith.constant 0 : index
    %c0_4 = arith.constant 0 : index
    %4 = vector.load %arg6[%c0_2, %c0_3, %c0_4] : memref<1x1x32xf32, #tpu.memory_space<vmem>>, vector<1x1x32xf32>
    %5 = vector.shape_cast %4 : vector<1x1x32xf32> to vector<1x32xf32>
    %c0_5 = arith.constant 0 : index
    %c0_6 = arith.constant 0 : index
    %c0_7 = arith.constant 0 : index
    %6 = vector.load %arg7[%c0_5, %c0_6, %c0_7] : memref<1x1x32xf32, #tpu.memory_space<vmem>>, vector<1x1x32xf32>
    %7 = vector.shape_cast %6 : vector<1x1x32xf32> to vector<1x32xf32>
    %cst = arith.constant dense<0.000000e+00> : vector<16xf32>
    %8 = vector.multi_reduction <add>, %3, %cst [1] : vector<16x32xf32> to vector<16xf32>
    %9 = vector.shape_cast %8 : vector<16xf32> to vector<16x1xf32>
    %cst_8 = arith.constant 3.200000e+01 : f32
    %10 = vector.broadcast %cst_8 : f32 to vector<16x1xf32>
    %11 = arith.divf %9, %10 : vector<16x1xf32>
    %12 = vector.broadcast %11 : vector<16x1xf32> to vector<16x32xf32>
    %13 = arith.subf %3, %12 : vector<16x32xf32>
    %14 = arith.mulf %13, %13 : vector<16x32xf32>
    %cst_9 = arith.constant dense<0.000000e+00> : vector<16xf32>
    %15 = vector.multi_reduction <add>, %14, %cst_9 [1] : vector<16x32xf32> to vector<16xf32>
    %16 = vector.shape_cast %15 : vector<16xf32> to vector<16x1xf32>
    %cst_10 = arith.constant 3.200000e+01 : f32
    %17 = vector.broadcast %cst_10 : f32 to vector<16x1xf32>
    %18 = arith.divf %16, %17 : vector<16x1xf32>
    %19 = vector.broadcast %11 : vector<16x1xf32> to vector<16x32xf32>
    %20 = arith.subf %3, %19 : vector<16x32xf32>
    %cst_11 = arith.constant 9.99999974E-6 : f32
    %21 = vector.broadcast %cst_11 : f32 to vector<16x1xf32>
    %22 = arith.addf %18, %21 : vector<16x1xf32>
    %23 = math.rsqrt %22 : vector<16x1xf32>
    %24 = vector.broadcast %23 : vector<16x1xf32> to vector<16x32xf32>
    %25 = arith.mulf %20, %24 : vector<16x32xf32>
    %26 = vector.broadcast %5 : vector<1x32xf32> to vector<16x32xf32>
    %27 = arith.mulf %25, %26 : vector<16x32xf32>
    %28 = vector.broadcast %7 : vector<1x32xf32> to vector<16x32xf32>
    %29 = arith.addf %27, %28 : vector<16x32xf32>
    %30 = arith.truncf %29 : vector<16x32xf32> to vector<16x32xbf16>
    %c0_12 = arith.constant 0 : index
    %c0_13 = arith.constant 0 : index
    %c0_14 = arith.constant 0 : index
    %31 = vector.load %arg8[%c0_12, %c0_13, %c0_14] : memref<1x32x160xbf16, #tpu.memory_space<vmem>>, vector<1x32x160xbf16>
    %32 = vector.shape_cast %31 : vector<1x32x160xbf16> to vector<32x160xbf16>
    %cst_15 = arith.constant dense<0.000000e+00> : vector<16x160xf32>
    %33 = tpu.matmul %30, %32, %cst_15 {dimension_numbers = #tpu.dot_dimension_numbers<[1], [0], [0], [1], [0, 0, 1, 1], [], []>} : vector<16x32xbf16>, vector<32x160xbf16>, vector<16x160xf32> -> vector<16x160xf32>
    %34 = vector.extract_strided_slice %33 {offsets = [0, 0], sizes = [16, 32], strides = [1, 1]} : vector<16x160xf32> to vector<16x32xf32>
    %c0_16 = arith.constant 0 : index
    %c0_17 = arith.constant 0 : index
    %35 = vector.load %arg2[%c0_16, %c0_17] : memref<16x32xf32, #tpu.memory_space<vmem>>, vector<16x32xf32>
    %36 = arith.mulf %34, %35 : vector<16x32xf32>
    %37 = vector.extract_strided_slice %33 {offsets = [0, 32], sizes = [16, 32], strides = [1, 1]} : vector<16x160xf32> to vector<16x32xf32>
    %c0_18 = arith.constant 0 : index
    %c0_19 = arith.constant 0 : index
    %38 = vector.load %arg3[%c0_18, %c0_19] : memref<16x32xf32, #tpu.memory_space<vmem>>, vector<16x32xf32>
    %39 = arith.mulf %37, %38 : vector<16x32xf32>
    %40 = arith.addf %36, %39 : vector<16x32xf32>
    %41 = vector.extract_strided_slice %33 {offsets = [0, 64], sizes = [16, 32], strides = [1, 1]} : vector<16x160xf32> to vector<16x32xf32>
    %c0_20 = arith.constant 0 : index
    %c0_21 = arith.constant 0 : index
    %42 = vector.load %arg4[%c0_20, %c0_21] : memref<16x32xf32, #tpu.memory_space<vmem>>, vector<16x32xf32>
    %43 = arith.mulf %41, %42 : vector<16x32xf32>
    %44 = vector.extract_strided_slice %33 {offsets = [0, 96], sizes = [16, 32], strides = [1, 1]} : vector<16x160xf32> to vector<16x32xf32>
    %c0_22 = arith.constant 0 : index
    %c0_23 = arith.constant 0 : index
    %45 = vector.load %arg5[%c0_22, %c0_23] : memref<16x32xf32, #tpu.memory_space<vmem>>, vector<16x32xf32>
    %46 = arith.mulf %44, %45 : vector<16x32xf32>
    %47 = arith.addf %43, %46 : vector<16x32xf32>
    %48 = vector.extract_strided_slice %33 {offsets = [0, 128], sizes = [16, 32], strides = [1, 1]} : vector<16x160xf32> to vector<16x32xf32>
    %49 = vector.extract_strided_slice %40 {offsets = [0, 0], sizes = [8, 8], strides = [1, 1]} : vector<16x32xf32> to vector<8x8xf32>
    %50 = vector.shape_cast %49 : vector<8x8xf32> to vector<1x8x8xf32>
    %51 = vector.extract_strided_slice %40 {offsets = [0, 8], sizes = [8, 8], strides = [1, 1]} : vector<16x32xf32> to vector<8x8xf32>
    %52 = vector.shape_cast %51 : vector<8x8xf32> to vector<1x8x8xf32>
    %53 = vector.extract_strided_slice %40 {offsets = [0, 16], sizes = [8, 8], strides = [1, 1]} : vector<16x32xf32> to vector<8x8xf32>
    %54 = vector.shape_cast %53 : vector<8x8xf32> to vector<1x8x8xf32>
    %55 = vector.extract_strided_slice %40 {offsets = [0, 24], sizes = [8, 8], strides = [1, 1]} : vector<16x32xf32> to vector<8x8xf32>
    %56 = vector.shape_cast %55 : vector<8x8xf32> to vector<1x8x8xf32>
    %57 = vector.extract_strided_slice %40 {offsets = [8, 0], sizes = [8, 8], strides = [1, 1]} : vector<16x32xf32> to vector<8x8xf32>
    %58 = vector.shape_cast %57 : vector<8x8xf32> to vector<1x8x8xf32>
    %59 = vector.extract_strided_slice %40 {offsets = [8, 8], sizes = [8, 8], strides = [1, 1]} : vector<16x32xf32> to vector<8x8xf32>
    %60 = vector.shape_cast %59 : vector<8x8xf32> to vector<1x8x8xf32>
    %61 = vector.extract_strided_slice %40 {offsets = [8, 16], sizes = [8, 8], strides = [1, 1]} : vector<16x32xf32> to vector<8x8xf32>
    %62 = vector.shape_cast %61 : vector<8x8xf32> to vector<1x8x8xf32>
    %63 = vector.extract_strided_slice %40 {offsets = [8, 24], sizes = [8, 8], strides = [1, 1]} : vector<16x32xf32> to vector<8x8xf32>
    %64 = vector.shape_cast %63 : vector<8x8xf32> to vector<1x8x8xf32>
    %65 = tpu.concatenate %50, %52, %54, %56, %58, %60, %62, %64 in 0 : vector<1x8x8xf32>, vector<1x8x8xf32>, vector<1x8x8xf32>, vector<1x8x8xf32>, vector<1x8x8xf32>, vector<1x8x8xf32>, vector<1x8x8xf32>, vector<1x8x8xf32> -> vector<8x8x8xf32>
    %66 = arith.truncf %65 : vector<8x8x8xf32> to vector<8x8x8xbf16>
    %67 = vector.extract_strided_slice %47 {offsets = [0, 0], sizes = [8, 8], strides = [1, 1]} : vector<16x32xf32> to vector<8x8xf32>
    %68 = vector.shape_cast %67 : vector<8x8xf32> to vector<1x8x8xf32>
    %69 = vector.extract_strided_slice %47 {offsets = [0, 8], sizes = [8, 8], strides = [1, 1]} : vector<16x32xf32> to vector<8x8xf32>
    %70 = vector.shape_cast %69 : vector<8x8xf32> to vector<1x8x8xf32>
    %71 = vector.extract_strided_slice %47 {offsets = [0, 16], sizes = [8, 8], strides = [1, 1]} : vector<16x32xf32> to vector<8x8xf32>
    %72 = vector.shape_cast %71 : vector<8x8xf32> to vector<1x8x8xf32>
    %73 = vector.extract_strided_slice %47 {offsets = [0, 24], sizes = [8, 8], strides = [1, 1]} : vector<16x32xf32> to vector<8x8xf32>
    %74 = vector.shape_cast %73 : vector<8x8xf32> to vector<1x8x8xf32>
    %75 = vector.extract_strided_slice %47 {offsets = [8, 0], sizes = [8, 8], strides = [1, 1]} : vector<16x32xf32> to vector<8x8xf32>
    %76 = vector.shape_cast %75 : vector<8x8xf32> to vector<1x8x8xf32>
    %77 = vector.extract_strided_slice %47 {offsets = [8, 8], sizes = [8, 8], strides = [1, 1]} : vector<16x32xf32> to vector<8x8xf32>
    %78 = vector.shape_cast %77 : vector<8x8xf32> to vector<1x8x8xf32>
    %79 = vector.extract_strided_slice %47 {offsets = [8, 16], sizes = [8, 8], strides = [1, 1]} : vector<16x32xf32> to vector<8x8xf32>
    %80 = vector.shape_cast %79 : vector<8x8xf32> to vector<1x8x8xf32>
    %81 = vector.extract_strided_slice %47 {offsets = [8, 24], sizes = [8, 8], strides = [1, 1]} : vector<16x32xf32> to vector<8x8xf32>
    %82 = vector.shape_cast %81 : vector<8x8xf32> to vector<1x8x8xf32>
    %83 = tpu.concatenate %68, %70, %72, %74, %76, %78, %80, %82 in 0 : vector<1x8x8xf32>, vector<1x8x8xf32>, vector<1x8x8xf32>, vector<1x8x8xf32>, vector<1x8x8xf32>, vector<1x8x8xf32>, vector<1x8x8xf32>, vector<1x8x8xf32> -> vector<8x8x8xf32>
    %84 = arith.truncf %83 : vector<8x8x8xf32> to vector<8x8x8xbf16>
    %85 = vector.extract_strided_slice %48 {offsets = [0, 0], sizes = [8, 8], strides = [1, 1]} : vector<16x32xf32> to vector<8x8xf32>
    %86 = vector.shape_cast %85 : vector<8x8xf32> to vector<1x8x8xf32>
    %87 = vector.extract_strided_slice %48 {offsets = [0, 8], sizes = [8, 8], strides = [1, 1]} : vector<16x32xf32> to vector<8x8xf32>
    %88 = vector.shape_cast %87 : vector<8x8xf32> to vector<1x8x8xf32>
    %89 = vector.extract_strided_slice %48 {offsets = [0, 16], sizes = [8, 8], strides = [1, 1]} : vector<16x32xf32> to vector<8x8xf32>
    %90 = vector.shape_cast %89 : vector<8x8xf32> to vector<1x8x8xf32>
    %91 = vector.extract_strided_slice %48 {offsets = [0, 24], sizes = [8, 8], strides = [1, 1]} : vector<16x32xf32> to vector<8x8xf32>
    %92 = vector.shape_cast %91 : vector<8x8xf32> to vector<1x8x8xf32>
    %93 = vector.extract_strided_slice %48 {offsets = [8, 0], sizes = [8, 8], strides = [1, 1]} : vector<16x32xf32> to vector<8x8xf32>
    %94 = vector.shape_cast %93 : vector<8x8xf32> to vector<1x8x8xf32>
    %95 = vector.extract_strided_slice %48 {offsets = [8, 8], sizes = [8, 8], strides = [1, 1]} : vector<16x32xf32> to vector<8x8xf32>
    %96 = vector.shape_cast %95 : vector<8x8xf32> to vector<1x8x8xf32>
    %97 = vector.extract_strided_slice %48 {offsets = [8, 16], sizes = [8, 8], strides = [1, 1]} : vector<16x32xf32> to vector<8x8xf32>
    %98 = vector.shape_cast %97 : vector<8x8xf32> to vector<1x8x8xf32>
    %99 = vector.extract_strided_slice %48 {offsets = [8, 24], sizes = [8, 8], strides = [1, 1]} : vector<16x32xf32> to vector<8x8xf32>
    %100 = vector.shape_cast %99 : vector<8x8xf32> to vector<1x8x8xf32>
    %101 = tpu.concatenate %86, %88, %90, %92, %94, %96, %98, %100 in 0 : vector<1x8x8xf32>, vector<1x8x8xf32>, vector<1x8x8xf32>, vector<1x8x8xf32>, vector<1x8x8xf32>, vector<1x8x8xf32>, vector<1x8x8xf32>, vector<1x8x8xf32> -> vector<8x8x8xf32>
    %102 = arith.truncf %101 : vector<8x8x8xf32> to vector<8x8x8xbf16>
    "tpu.trace_start"() <{level = 10 : i32, message = "bqd,bkd->bqk"}> : () -> ()
    %cst_24 = arith.constant dense<0.000000e+00> : vector<8x8x8xf32>
    %103 = tpu.matmul %66, %84, %cst_24 {dimension_numbers = #tpu.dot_dimension_numbers<[2], [2], [1], [1], [0, 0, 0, 1, 1, 1], [0], [0]>} : vector<8x8x8xbf16>, vector<8x8x8xbf16>, vector<8x8x8xf32> -> vector<8x8x8xf32>
    "tpu.trace_stop"() : () -> ()
    %cst_25 = arith.constant dense<0xFF800000> : vector<8x8xf32>
    %104 = vector.multi_reduction <maximumf>, %103, %cst_25 [2] : vector<8x8x8xf32> to vector<8x8xf32>
    %105 = vector.shape_cast %104 : vector<8x8xf32> to vector<8x8x1xf32>
    %106 = vector.broadcast %105 : vector<8x8x1xf32> to vector<8x8x8xf32>
    %107 = arith.subf %103, %106 : vector<8x8x8xf32>
    %108 = math.exp %107 : vector<8x8x8xf32>
    %cst_26 = arith.constant dense<0.000000e+00> : vector<8x8xf32>
    %109 = vector.multi_reduction <add>, %108, %cst_26 [2] : vector<8x8x8xf32> to vector<8x8xf32>
    %110 = vector.shape_cast %109 : vector<8x8xf32> to vector<8x8x1xf32>
    %111 = tpu.reciprocal %110 {approx = true} : vector<8x8x1xf32> -> vector<8x8x1xf32>
    %112 = vector.broadcast %111 : vector<8x8x1xf32> to vector<8x8x8xf32>
    %113 = arith.mulf %108, %112 : vector<8x8x8xf32>
    %114 = arith.truncf %113 : vector<8x8x8xf32> to vector<8x8x8xbf16>
    "tpu.trace_start"() <{level = 10 : i32, message = "bqk,bkd->bqd"}> : () -> ()
    %cst_27 = arith.constant dense<0.000000e+00> : vector<8x8x8xf32>
    %115 = tpu.matmul %114, %102, %cst_27 {dimension_numbers = #tpu.dot_dimension_numbers<[2], [1], [1], [2], [0, 0, 0, 1, 1, 2], [0], [0]>} : vector<8x8x8xbf16>, vector<8x8x8xbf16>, vector<8x8x8xf32> -> vector<8x8x8xf32>
    "tpu.trace_stop"() : () -> ()
    %116 = vector.extract_strided_slice %115 {offsets = [0, 0, 0], sizes = [1, 8, 8], strides = [1, 1, 1]} : vector<8x8x8xf32> to vector<1x8x8xf32>
    %117 = vector.shape_cast %116 : vector<1x8x8xf32> to vector<8x8xf32>
    %118 = vector.extract_strided_slice %115 {offsets = [1, 0, 0], sizes = [1, 8, 8], strides = [1, 1, 1]} : vector<8x8x8xf32> to vector<1x8x8xf32>
    %119 = vector.shape_cast %118 : vector<1x8x8xf32> to vector<8x8xf32>
    %120 = vector.extract_strided_slice %115 {offsets = [2, 0, 0], sizes = [1, 8, 8], strides = [1, 1, 1]} : vector<8x8x8xf32> to vector<1x8x8xf32>
    %121 = vector.shape_cast %120 : vector<1x8x8xf32> to vector<8x8xf32>
    %122 = vector.extract_strided_slice %115 {offsets = [3, 0, 0], sizes = [1, 8, 8], strides = [1, 1, 1]} : vector<8x8x8xf32> to vector<1x8x8xf32>
    %123 = vector.shape_cast %122 : vector<1x8x8xf32> to vector<8x8xf32>
    %124 = tpu.concatenate %117, %119, %121, %123 in 1 : vector<8x8xf32>, vector<8x8xf32>, vector<8x8xf32>, vector<8x8xf32> -> vector<8x32xf32>
    %125 = vector.extract_strided_slice %115 {offsets = [4, 0, 0], sizes = [1, 8, 8], strides = [1, 1, 1]} : vector<8x8x8xf32> to vector<1x8x8xf32>
    %126 = vector.shape_cast %125 : vector<1x8x8xf32> to vector<8x8xf32>
    %127 = vector.extract_strided_slice %115 {offsets = [5, 0, 0], sizes = [1, 8, 8], strides = [1, 1, 1]} : vector<8x8x8xf32> to vector<1x8x8xf32>
    %128 = vector.shape_cast %127 : vector<1x8x8xf32> to vector<8x8xf32>
    %129 = vector.extract_strided_slice %115 {offsets = [6, 0, 0], sizes = [1, 8, 8], strides = [1, 1, 1]} : vector<8x8x8xf32> to vector<1x8x8xf32>
    %130 = vector.shape_cast %129 : vector<1x8x8xf32> to vector<8x8xf32>
    %131 = vector.extract_strided_slice %115 {offsets = [7, 0, 0], sizes = [1, 8, 8], strides = [1, 1, 1]} : vector<8x8x8xf32> to vector<1x8x8xf32>
    %132 = vector.shape_cast %131 : vector<1x8x8xf32> to vector<8x8xf32>
    %133 = tpu.concatenate %126, %128, %130, %132 in 1 : vector<8x8xf32>, vector<8x8xf32>, vector<8x8xf32>, vector<8x8xf32> -> vector<8x32xf32>
    %134 = tpu.concatenate %124, %133 in 0 : vector<8x32xf32>, vector<8x32xf32> -> vector<16x32xf32>
    %135 = arith.truncf %134 : vector<16x32xf32> to vector<16x32xbf16>
    %c0_28 = arith.constant 0 : index
    %c0_29 = arith.constant 0 : index
    %c0_30 = arith.constant 0 : index
    %136 = vector.load %arg9[%c0_28, %c0_29, %c0_30] : memref<1x32x32xbf16, #tpu.memory_space<vmem>>, vector<1x32x32xbf16>
    %137 = vector.shape_cast %136 : vector<1x32x32xbf16> to vector<32x32xbf16>
    %cst_31 = arith.constant dense<0.000000e+00> : vector<16x32xf32>
    %138 = tpu.matmul %135, %137, %cst_31 {dimension_numbers = #tpu.dot_dimension_numbers<[1], [0], [0], [1], [0, 0, 1, 1], [], []>} : vector<16x32xbf16>, vector<32x32xbf16>, vector<16x32xf32> -> vector<16x32xf32>
    %139 = arith.addf %3, %138 : vector<16x32xf32>
    %c0_32 = arith.constant 0 : index
    %c0_33 = arith.constant 0 : index
    %c0_34 = arith.constant 0 : index
    %140 = vector.load %arg10[%c0_32, %c0_33, %c0_34] : memref<1x1x32xf32, #tpu.memory_space<vmem>>, vector<1x1x32xf32>
    %141 = vector.shape_cast %140 : vector<1x1x32xf32> to vector<1x32xf32>
    %c0_35 = arith.constant 0 : index
    %c0_36 = arith.constant 0 : index
    %c0_37 = arith.constant 0 : index
    %142 = vector.load %arg11[%c0_35, %c0_36, %c0_37] : memref<1x1x32xf32, #tpu.memory_space<vmem>>, vector<1x1x32xf32>
    %143 = vector.shape_cast %142 : vector<1x1x32xf32> to vector<1x32xf32>
    %cst_38 = arith.constant dense<0.000000e+00> : vector<16xf32>
    %144 = vector.multi_reduction <add>, %139, %cst_38 [1] : vector<16x32xf32> to vector<16xf32>
    %145 = vector.shape_cast %144 : vector<16xf32> to vector<16x1xf32>
    %cst_39 = arith.constant 3.200000e+01 : f32
    %146 = vector.broadcast %cst_39 : f32 to vector<16x1xf32>
    %147 = arith.divf %145, %146 : vector<16x1xf32>
    %148 = vector.broadcast %147 : vector<16x1xf32> to vector<16x32xf32>
    %149 = arith.subf %139, %148 : vector<16x32xf32>
    %150 = arith.mulf %149, %149 : vector<16x32xf32>
    %cst_40 = arith.constant dense<0.000000e+00> : vector<16xf32>
    %151 = vector.multi_reduction <add>, %150, %cst_40 [1] : vector<16x32xf32> to vector<16xf32>
    %152 = vector.shape_cast %151 : vector<16xf32> to vector<16x1xf32>
    %cst_41 = arith.constant 3.200000e+01 : f32
    %153 = vector.broadcast %cst_41 : f32 to vector<16x1xf32>
    %154 = arith.divf %152, %153 : vector<16x1xf32>
    %155 = vector.broadcast %147 : vector<16x1xf32> to vector<16x32xf32>
    %156 = arith.subf %139, %155 : vector<16x32xf32>
    %cst_42 = arith.constant 9.99999974E-6 : f32
    %157 = vector.broadcast %cst_42 : f32 to vector<16x1xf32>
    %158 = arith.addf %154, %157 : vector<16x1xf32>
    %159 = math.rsqrt %158 : vector<16x1xf32>
    %160 = vector.broadcast %159 : vector<16x1xf32> to vector<16x32xf32>
    %161 = arith.mulf %156, %160 : vector<16x32xf32>
    %162 = vector.broadcast %141 : vector<1x32xf32> to vector<16x32xf32>
    %163 = arith.mulf %161, %162 : vector<16x32xf32>
    %164 = vector.broadcast %143 : vector<1x32xf32> to vector<16x32xf32>
    %165 = arith.addf %163, %164 : vector<16x32xf32>
    %166 = arith.truncf %165 : vector<16x32xf32> to vector<16x32xbf16>
    %c0_43 = arith.constant 0 : index
    %c0_44 = arith.constant 0 : index
    %c0_45 = arith.constant 0 : index
    %167 = vector.load %arg12[%c0_43, %c0_44, %c0_45] : memref<1x32x128xbf16, #tpu.memory_space<vmem>>, vector<1x32x128xbf16>
    %168 = vector.shape_cast %167 : vector<1x32x128xbf16> to vector<32x128xbf16>
    %cst_46 = arith.constant dense<0.000000e+00> : vector<16x128xf32>
    %169 = tpu.matmul %166, %168, %cst_46 {dimension_numbers = #tpu.dot_dimension_numbers<[1], [0], [0], [1], [0, 0, 1, 1], [], []>} : vector<16x32xbf16>, vector<32x128xbf16>, vector<16x128xf32> -> vector<16x128xf32>
    %170 = vector.extract_strided_slice %169 {offsets = [0, 0], sizes = [16, 64], strides = [1, 1]} : vector<16x128xf32> to vector<16x64xf32>
    %171 = vector.extract_strided_slice %169 {offsets = [0, 64], sizes = [16, 64], strides = [1, 1]} : vector<16x128xf32> to vector<16x64xf32>
    %172 = arith.negf %170 : vector<16x64xf32>
    %173 = math.exp %172 : vector<16x64xf32>
    %cst_47 = arith.constant 1.000000e+00 : f32
    %174 = vector.broadcast %cst_47 : f32 to vector<16x64xf32>
    %175 = arith.addf %174, %173 : vector<16x64xf32>
    %176 = arith.divf %174, %175 : vector<16x64xf32>
    %177 = arith.mulf %170, %176 : vector<16x64xf32>
    %178 = arith.mulf %177, %171 : vector<16x64xf32>
    %179 = arith.truncf %178 : vector<16x64xf32> to vector<16x64xbf16>
    %c0_48 = arith.constant 0 : index
    %c0_49 = arith.constant 0 : index
    %c0_50 = arith.constant 0 : index
    %180 = vector.load %arg13[%c0_48, %c0_49, %c0_50] : memref<1x64x32xbf16, #tpu.memory_space<vmem>>, vector<1x64x32xbf16>
    %181 = vector.shape_cast %180 : vector<1x64x32xbf16> to vector<64x32xbf16>
    %cst_51 = arith.constant dense<0.000000e+00> : vector<16x32xf32>
    %182 = tpu.matmul %179, %181, %cst_51 {dimension_numbers = #tpu.dot_dimension_numbers<[1], [0], [0], [1], [0, 0, 1, 1], [], []>} : vector<16x64xbf16>, vector<64x32xbf16>, vector<16x32xf32> -> vector<16x32xf32>
    %183 = arith.addf %139, %182 : vector<16x32xf32>
    %c0_52 = arith.constant 0 : index
    %c0_53 = arith.constant 0 : index
    %184 = vector.load %arg17[%c0_52, %c0_53] : memref<16x32xf32, #tpu.memory_space<vmem>>, vector<16x32xf32>
    tpu.vector_store %arg17[%c0_52, %c0_53], %183 {strides = array<i32>} : memref<16x32xf32, #tpu.memory_space<vmem>>, vector<16x32xf32>,
    %c1_i32 = arith.constant 1 : i32
    %185 = arith.cmpi eq, %arg0, %c1_i32 : i32
    %186 = arith.extui %185 : i1 to i32
    %c0_i32_54 = arith.constant 0 : i32
    %187 = arith.cmpi ne, %186, %c0_i32_54 : i32
    scf.if %187 {
      %c0_55 = arith.constant 0 : index
      %c0_56 = arith.constant 0 : index
      %188 = vector.load %arg14[%c0_55, %c0_56] : memref<1x32xf32, #tpu.memory_space<vmem>>, vector<1x32xf32>
      %c0_57 = arith.constant 0 : index
      %c0_58 = arith.constant 0 : index
      %189 = vector.load %arg15[%c0_57, %c0_58] : memref<1x32xf32, #tpu.memory_space<vmem>>, vector<1x32xf32>
      %cst_59 = arith.constant dense<0.000000e+00> : vector<16xf32>
      %190 = vector.multi_reduction <add>, %183, %cst_59 [1] : vector<16x32xf32> to vector<16xf32>
      %191 = vector.shape_cast %190 : vector<16xf32> to vector<16x1xf32>
      %cst_60 = arith.constant 3.200000e+01 : f32
      %192 = vector.broadcast %cst_60 : f32 to vector<16x1xf32>
      %193 = arith.divf %191, %192 : vector<16x1xf32>
      %194 = vector.broadcast %193 : vector<16x1xf32> to vector<16x32xf32>
      %195 = arith.subf %183, %194 : vector<16x32xf32>
      %196 = arith.mulf %195, %195 : vector<16x32xf32>
      %cst_61 = arith.constant dense<0.000000e+00> : vector<16xf32>
      %197 = vector.multi_reduction <add>, %196, %cst_61 [1] : vector<16x32xf32> to vector<16xf32>
      %198 = vector.shape_cast %197 : vector<16xf32> to vector<16x1xf32>
      %cst_62 = arith.constant 3.200000e+01 : f32
      %199 = vector.broadcast %cst_62 : f32 to vector<16x1xf32>
      %200 = arith.divf %198, %199 : vector<16x1xf32>
      %201 = vector.broadcast %193 : vector<16x1xf32> to vector<16x32xf32>
      %202 = arith.subf %183, %201 : vector<16x32xf32>
      %cst_63 = arith.constant 9.99999974E-6 : f32
      %203 = vector.broadcast %cst_63 : f32 to vector<16x1xf32>
      %204 = arith.addf %200, %203 : vector<16x1xf32>
      %205 = math.rsqrt %204 : vector<16x1xf32>
      %206 = vector.broadcast %205 : vector<16x1xf32> to vector<16x32xf32>
      %207 = arith.mulf %202, %206 : vector<16x32xf32>
      %208 = vector.broadcast %188 : vector<1x32xf32> to vector<16x32xf32>
      %209 = arith.mulf %207, %208 : vector<16x32xf32>
      %210 = vector.broadcast %189 : vector<1x32xf32> to vector<16x32xf32>
      %211 = arith.addf %209, %210 : vector<16x32xf32>
      %c0_64 = arith.constant 0 : index
      %c0_65 = arith.constant 0 : index
      %212 = vector.load %arg16[%c0_64, %c0_65] : memref<16x32xf32, #tpu.memory_space<vmem>>, vector<16x32xf32>
      tpu.vector_store %arg16[%c0_64, %c0_65], %211 {strides = array<i32>} : memref<16x32xf32, #tpu.memory_space<vmem>>, vector<16x32xf32>,
    } else {
    }
    return
  }
  func.func @transform_0(%arg0: i32) -> (i32, i32) {
    %c0_i32 = arith.constant 0 : i32
    %c0_i32_0 = arith.constant 0 : i32
    %c0_i32_1 = arith.constant 0 : i32
    return %c0_i32, %c0_i32_0 : i32, i32
  }
  func.func @transform_1(%arg0: i32) -> (i32, i32) {
    %c0_i32 = arith.constant 0 : i32
    %c0_i32_0 = arith.constant 0 : i32
    %c0_i32_1 = arith.constant 0 : i32
    return %c0_i32, %c0_i32_0 : i32, i32
  }
  func.func @transform_2(%arg0: i32) -> (i32, i32) {
    %c0_i32 = arith.constant 0 : i32
    %c0_i32_0 = arith.constant 0 : i32
    %c0_i32_1 = arith.constant 0 : i32
    return %c0_i32, %c0_i32_0 : i32, i32
  }
  func.func @transform_3(%arg0: i32) -> (i32, i32) {
    %c0_i32 = arith.constant 0 : i32
    %c0_i32_0 = arith.constant 0 : i32
    %c0_i32_1 = arith.constant 0 : i32
    return %c0_i32, %c0_i32_0 : i32, i32
  }
  func.func @transform_4(%arg0: i32) -> (i32, i32) {
    %c0_i32 = arith.constant 0 : i32
    %c0_i32_0 = arith.constant 0 : i32
    %c0_i32_1 = arith.constant 0 : i32
    return %c0_i32, %c0_i32_0 : i32, i32
  }
  func.func @transform_5(%arg0: i32) -> (i32, i32, i32) {
    %c0_i32 = arith.constant 0 : i32
    %c0_i32_0 = arith.constant 0 : i32
    %c0_i32_1 = arith.constant 0 : i32
    return %arg0, %c0_i32, %c0_i32_0 : i32, i32, i32
  }
  func.func @transform_6(%arg0: i32) -> (i32, i32, i32) {
    %c0_i32 = arith.constant 0 : i32
    %c0_i32_0 = arith.constant 0 : i32
    %c0_i32_1 = arith.constant 0 : i32
    return %arg0, %c0_i32, %c0_i32_0 : i32, i32, i32
  }
  func.func @transform_7(%arg0: i32) -> (i32, i32, i32) {
    %c0_i32 = arith.constant 0 : i32
    %c0_i32_0 = arith.constant 0 : i32
    %c0_i32_1 = arith.constant 0 : i32
    return %arg0, %c0_i32, %c0_i32_0 : i32, i32, i32
  }
  func.func @transform_8(%arg0: i32) -> (i32, i32, i32) {
    %c0_i32 = arith.constant 0 : i32
    %c0_i32_0 = arith.constant 0 : i32
    %c0_i32_1 = arith.constant 0 : i32
    return %arg0, %c0_i32, %c0_i32_0 : i32, i32, i32
  }
  func.func @transform_9(%arg0: i32) -> (i32, i32, i32) {
    %c0_i32 = arith.constant 0 : i32
    %c0_i32_0 = arith.constant 0 : i32
    %c0_i32_1 = arith.constant 0 : i32
    return %arg0, %c0_i32, %c0_i32_0 : i32, i32, i32
  }
  func.func @transform_10(%arg0: i32) -> (i32, i32, i32) {
    %c0_i32 = arith.constant 0 : i32
    %c0_i32_0 = arith.constant 0 : i32
    %c0_i32_1 = arith.constant 0 : i32
    return %arg0, %c0_i32, %c0_i32_0 : i32, i32, i32
  }
  func.func @transform_11(%arg0: i32) -> (i32, i32, i32) {
    %c0_i32 = arith.constant 0 : i32
    %c0_i32_0 = arith.constant 0 : i32
    %c0_i32_1 = arith.constant 0 : i32
    return %arg0, %c0_i32, %c0_i32_0 : i32, i32, i32
  }
  func.func @transform_12(%arg0: i32) -> (i32, i32, i32) {
    %c0_i32 = arith.constant 0 : i32
    %c0_i32_0 = arith.constant 0 : i32
    %c0_i32_1 = arith.constant 0 : i32
    return %arg0, %c0_i32, %c0_i32_0 : i32, i32, i32
  }
  func.func @transform_13(%arg0: i32) -> (i32, i32) {
    %c0_i32 = arith.constant 0 : i32
    %c0_i32_0 = arith.constant 0 : i32
    %c0_i32_1 = arith.constant 0 : i32
    return %c0_i32, %c0_i32_0 : i32, i32
  }
  func.func @transform_14(%arg0: i32) -> (i32, i32) {
    %c0_i32 = arith.constant 0 : i32
    %c0_i32_0 = arith.constant 0 : i32
    %c0_i32_1 = arith.constant 0 : i32
    return %c0_i32, %c0_i32_0 : i32, i32
  }
  func.func @transform_15(%arg0: i32) -> (i32, i32) {
    %c0_i32 = arith.constant 0 : i32
    %c0_i32_0 = arith.constant 0 : i32
    %c0_i32_1 = arith.constant 0 : i32
    return %c0_i32, %c0_i32_0 : i32, i32
  }
}

</mosaic_0001>

<bundles_post_ra>
// kernel: tpu_custom_call.1
= control target key start
LH: loop header
LB: loop body
LE: loop exit
PB: predicated region body
PF: predicated region fallthrough
CT: control target
= control target key end

     0   :  { %s3654_s0 = inlined_call_operand.hbm [shape: f32[16,32], index: 0, kind: input, shape index: {}]   ;;  %s3655_s1 = inlined_call_operand.hbm [shape: f32[16,32], index: 1, kind: input, shape index: {}]   ;;  %s3656_s2 = inlined_call_operand.hbm [shape: f32[16,32], index: 2, kind: input, shape index: {}]   ;;  %s3657_s3 = inlined_call_operand.hbm [shape: f32[16,32], index: 3, kind: input, shape index: {}]   ;;  %s3658_s4 = inlined_call_operand.hbm [shape: f32[16,32], index: 4, kind: input, shape index: {}]   ;;  %s3659_s5 = inlined_call_operand.vmem [shape: f32[2,1,32], index: 5, kind: input, shape index: {}]   ;;  %s3660_s6 = inlined_call_operand.vmem [shape: f32[2,1,32], index: 6, kind: input, shape index: {}]   ;;  %s3661_s7 = inlined_call_operand.vmem [shape: bf16[2,32,160], index: 7, kind: input, shape index: {}]   ;;  %s3662_s8 = inlined_call_operand.vmem [shape: bf16[2,32,32], index: 8, kind: input, shape index: {}]   ;;  %s3663_s9 = inlined_call_operand.vmem [shape: f32[2,1,32], index: 9, kind: input, shape index: {}]   ;;  %s3664_s10 = inlined_call_operand.vmem [shape: f32[2,1,32], index: 10, kind: input, shape index: {}]   ;;  %s3665_s11 = inlined_call_operand.hbm [shape: bf16[2,32,128], index: 11, kind: input, shape index: {}]   ;;  %s3666_s12 = inlined_call_operand.vmem [shape: bf16[2,64,32], index: 12, kind: input, shape index: {}]   ;;  %s3667_s13 = inlined_call_operand.vmem [shape: f32[1,32], index: 13, kind: input, shape index: {}]   ;;  %s3668_s14 = inlined_call_operand.vmem [shape: f32[1,32], index: 14, kind: input, shape index: {}]   ;;  %s3669_s15 = inlined_call_operand.hbm [shape: f32[16,32], index: 15, kind: output, shape index: {}]  }
   0x1   :  { %3673 = sst [smem:[#allocation21_spill]] %s3654_s0 }
   0x2   :  { %3674 = sst [smem:[#allocation22_spill]] %s3655_s1 }
   0x3   :  { %3675 = sst [smem:[#allocation23_spill]] %s3656_s2 }
   0x4   :  { %3676 = sst [smem:[#allocation24_spill]] %s3657_s3 }
   0x5   :  { %3677 = sst [smem:[#allocation25_spill]] %s3658_s4 }
   0x6   :  { %3678 = sst [smem:[#allocation26_spill]] %s3665_s11 }
   0x7   :  { %3679 = sst [smem:[#allocation27_spill]] %s3668_s14 }
   0x8   :  { %3680 = sst [smem:[#allocation28_spill]] %s3669_s15 }
   0x9   :  { %20 = vsyncpa [#allocation4], 0 }
   0xa   :  { %21 = vsyncpa [#allocation7], 0 }
   0xb   :  { %22 = vsyncpa [#allocation10], 0 }
   0xc   :  { %23 = vsyncpa [#allocation13], 0 }
   0xd   :  { %25 = vsyncpa [#allocation13 + $0x1], 0 }
   0xe   :  { %26 = vsyncpa [#allocation5], 0  ;;  %s3132_s18 = smov 0   ;;  %s3134_s19 = smov 0  }
   0xf   :  { %s3136_s20 = smov 0   ;;  %s3138_s21 = smov 0  }
  0x10 LB: > { %s3153_s22 = sadd.s32 4294967295, %s3026_s21   ;;  %p2359_p0 = scmp.ge.s32.totalorder %s3026_s21, 1  ;;  %s3026_s21 = sphi %s3138_s21, %s3712_s21   ;;  %s3022_s20 = sphi %s3136_s20, %s3711_s20   ;;  %s3018_s19 = sphi %s3134_s19, %s3710_s19   ;;  %s3014_s18 = sphi %s3132_s18, %s3709_s18  }
  0x11   : > { %p3670_p1 = scmp.eq.s32.totalorder %s3153_s22, 0  ;;  %p413_p2 = scmp.lt.s32.totalorder %s3026_s21, 3 }
  0x12   : > { %s3028_s24 = smov [#allocation6]   ;;  %s3029_s26 = smov [#allocation9]  }
  0x13   : > { %p3159_p4 = pnand %p2359_p0, %p413_p2  ;;  %s438_s25 = sshll.u32 %s3028_s24, 4  ;;  %s439_s25 = int_to_ptr.vmem [resolvable:$true] %s438_s25 }
  0x14   : > { %s464_s27 = sshll.u32 %s3029_s26, 4  ;;  %s3030_s29 = smov [#allocation3]   ;;  %s3171_s27 = int_to_ptr.vmem [resolvable:$true] %s464_s27 }
  0x15   : > { %s3681_s23 = scalar_select %p3159_p4, 1, 0 }
  0x16   : > { %p2625_p5 = pneg %p3159_p4  ;;  %s425_s30 = sshll.u32 %s3030_s29, 4  ;;  %s3173_s30 = int_to_ptr.vmem [resolvable:$true] %s425_s30 }
  0x17   : > { %s2805_s17 = scalar_lea.vmem %s439_s25, 256  ;;  %p2813_p11 = scmp.lt.s32.totalorder %s439_s25, %s439_s25 }
  0x18   : > { %p3167_p6 = pnand %p2625_p5, %p3670_p1  ;;  %p2806_p8 = scmp.ne.s32.totalorder %s439_s25, %s2805_s17 }
  0x19   : > { %p2814_p12 = scmp.lt.s32.totalorder %s2805_s17, %s2805_s17 }
  0x1a   : > { %p3177_p7 = pneg %p3167_p6 }
  0x1b   : > { %p2815_p13 = por %p2814_p12, %p2813_p11 }
  0x1c   : > { %p2808_p9 = pnand %p2806_p8, %p3177_p7 }
  0x1e   : > { %p2809_p10 = pneg %p2808_p9 }
  0x20   : > { %p2816_p0 = pnand %p2815_p13, %p2809_p10 }
  0x22   : > { %2819 = shalt.err (!%p2816_p0)
}
  0x23   : > { %s3031_s24 = smov 128   ;;  %s3032_s26 = smov 8  }
  0x24   : > { %s3684_s1 = sld [smem:[#allocation22_spill]]  ;;  %s2831_s14 = scalar_lea.vmem %s3171_s27, 256 }
  0x25   : > { %p2832_p2 = scmp.ne.s32.totalorder %s3171_s27, %s2831_s14  ;;  %p2839_p9 = scmp.lt.s32.totalorder %s3171_s27, %s3171_s27 }
  0x26   : > { %p2840_p10 = scmp.lt.s32.totalorder %s2831_s14, %s2831_s14 }
  0x27   : > { %p2834_p5 = pnand %p2832_p2, %p3177_p7 }
  0x28   : > { %p2841_p11 = por %p2840_p10, %p2839_p9 }
  0x29   : > { %p2835_p8 = pneg %p2834_p5 }
  0x2a   : > { %2631 = dma.hbm_to_vmem [thread:$0]  (!%p3167_p6), %s3684_s1, 256, %s439_s25, [#allocation7], %s3031_s24, %s3031_s24, %s3032_s26  }
  0x2b   : > { %p2842_p12 = pnand %p2841_p11, %p2835_p8 }
  0x2d   : > { %2845 = shalt.err (!%p2842_p12)
}
  0x2e   : > { %s3685_s3 = sld [smem:[#allocation24_spill]]  ;;  %s2857_s25 = scalar_lea.vmem %s3173_s30, 256 }
  0x2f   : > { %p2858_p13 = scmp.ne.s32.totalorder %s3173_s30, %s2857_s25  ;;  %p2865_p5 = scmp.lt.s32.totalorder %s3173_s30, %s3173_s30 }
  0x30   : > { %p2866_p8 = scmp.lt.s32.totalorder %s2857_s25, %s2857_s25 }
  0x31   : > { %p2860_p0 = pnand %p2858_p13, %p3177_p7 }
  0x32   : > { %p2867_p9 = por %p2866_p8, %p2865_p5 }
  0x33   : > { %p2861_p2 = pneg %p2860_p0 }
  0x34   : > { %2637 = dma.hbm_to_vmem [thread:$0]  (!%p3167_p6), %s3685_s3, 256, %s3171_s27, [#allocation10], %s3031_s24, %s3031_s24, %s3032_s26  }
  0x35   : > { %p2868_p10 = pnand %p2867_p9, %p2861_p2 }
  0x37   : > { %2871 = shalt.err (!%p2868_p10)
}
  0x38   : > { %s3686_s0 = sld [smem:[#allocation21_spill]]  ;;  %s3033_s27 = smov [#allocation8]  }
  0x39   : > { %s451_s17 = sshll.u32 %s3033_s27, 4  ;;  %s3034_s15 = smov [#allocation11]   ;;  %s452_s17 = int_to_ptr.vmem [resolvable:$true] %s451_s17 }
  0x3a   : > { %s477_s1 = sshll.u32 %s3034_s15, 4  ;;  %s2883_s25 = scalar_lea.vmem %s452_s17, 256  ;;  %s478_s1 = int_to_ptr.vmem [resolvable:$true] %s477_s1 }
  0x3b   : > { %p2884_p11 = scmp.ne.s32.totalorder %s452_s17, %s2883_s25  ;;  %p2891_p0 = scmp.lt.s32.totalorder %s452_s17, %s452_s17 }
  0x3c   : > { %p2892_p2 = scmp.lt.s32.totalorder %s2883_s25, %s2883_s25 }
  0x3d   : > { %p2886_p12 = pnand %p2884_p11, %p3177_p7 }
  0x3e   : > { %2628 = dma.hbm_to_vmem [thread:$0]  (!%p3167_p6), %s3686_s0, 256, %s3173_s30, [#allocation4], %s3031_s24, %s3031_s24, %s3032_s26  }
  0x3f   : > { %p2887_p13 = pneg %p2886_p12  ;;  %p2893_p5 = por %p2892_p2, %p2891_p0 }
  0x41   : > { %p2894_p8 = pnand %p2893_p5, %p2887_p13 }
  0x43   : > { %2897 = shalt.err (!%p2894_p8)
}
  0x44   : > { %s3687_s2 = sld [smem:[#allocation23_spill]]  ;;  %s2909_s29 = scalar_lea.vmem %s478_s1, 256 }
  0x45   : > { %p2910_p9 = scmp.ne.s32.totalorder %s478_s1, %s2909_s29  ;;  %p2917_p12 = scmp.lt.s32.totalorder %s478_s1, %s478_s1 }
  0x46   : > { %p2918_p0 = scmp.lt.s32.totalorder %s2909_s29, %s2909_s29 }
  0x47   : > { %p2912_p10 = pnand %p2910_p9, %p3177_p7 }
  0x48   : > { %p2919_p13 = por %p2918_p0, %p2917_p12 }
  0x49   : > { %p2913_p11 = pneg %p2912_p10 }
  0x4a   : > { %2634 = dma.hbm_to_vmem [thread:$0]  (!%p3167_p6), %s3687_s2, 256, %s452_s17, [#allocation7], %s3031_s24, %s3031_s24, %s3032_s26  }
  0x4b   : > { %p2920_p2 = pnand %p2919_p13, %p2913_p11 }
  0x4d   : > { %2923 = shalt.err (!%p2920_p2)
}
  0x4e   : > { %s3688_s4 = sld [smem:[#allocation25_spill]]  ;;  %s3242_s28 = sadd.s32 1, %s3026_s21  }
  0x4f   : > { %s297_s16 = ssub.s32 %s3026_s21, %s3242_s28  ;;  %s300_s17 = sadd.s32 1, %s3022_s20 }
  0x50   : > { %p298_p7 = scmp.eq.s32.totalorder %s297_s16, 0  ;;  %p307_p5 = scmp.ne.s32.totalorder %s3022_s20, %s3018_s19 }
  0x51   : > { %p308_p8 = scmp.eq.s32.totalorder %s3026_s21, 0  ;;  %p313_p9 = scmp.ne.s32.totalorder %s3018_s19, %s3014_s18 }
  0x52   : > { %s3253_s25 = scalar_select %p298_p7, %s3022_s20, %s300_s17  }
  0x53   : > { %p309_p10 = por %p308_p8, %p307_p5  ;;  %p3257_p11 = por %p3670_p1, %p313_p9 }
  0x54   : > { %2640 = dma.hbm_to_vmem [thread:$0]  (!%p3167_p6), %s3688_s4, 256, %s478_s1, [#allocation10], %s3031_s24, %s3031_s24, %s3032_s26  }
  0x55   : > { %3689 = sst [smem:[#allocation20_spill]] %s3253_s25  ;;  %p2650_p12 = scmp.lt.s32.totalorder %s3026_s21, 2 }
  0x56   : > { %s3690_s30 = scalar_select %p3257_p11, 1, 0 }
  0x57   : > { %s537_s14 = sand.u32 1, %s3022_s20   ;;  %s2428_s24 = sshll.u32 %s3026_s21, 8 }
  0x58   : > { %s2366_s1 = sshll.u32 %s537_s14, 4  ;;  %s3691_s11 = sld [smem:[#allocation26_spill]] }
  0x59   : > { %s541_s18 = scalar_lea.vmem [#allocation12], %s2366_s1  ;;  %p3271_p6 = pnand %p2650_p12, %p309_p10 }
  0x5a   : > { %s548_s15 = sshll.u32 %s541_s18, 4  ;;  %s3275_s17 = scalar_lea.sflag [#allocation13], %s537_s14  ;;  %s3269_s15 = int_to_ptr.vmem [resolvable:$true] %s548_s15 }
  0x5b   : > { %p2926_p13 = pneg %p3271_p6 }
  0x5e   : > { %s3267_s27 = scalar_lea.hbm %s3691_s11, %s2428_s24  ;;  %s2929_s1 = scalar_lea.hbm %s3691_s11, 512 }
  0x5f   : > { %s2924_s21 = scalar_lea.hbm %s3267_s27, 256  ;;  %p2930_p5 = scmp.lt.s32.totalorder %s3267_s27, %s3691_s11 }
  0x60   : > { %p2925_p0 = scmp.ne.s32.totalorder %s3267_s27, %s2924_s21  ;;  %p2931_p8 = scmp.lt.s32.totalorder %s2929_s1, %s2924_s21 }
  0x62   : > { %p2927_p2 = pnand %p2926_p13, %p2925_p0  ;;  %p2932_p9 = por %p2931_p8, %p2930_p5 }
  0x64   : > { %p2928_p7 = pneg %p2927_p2 }
  0x66   : > { %p2933_p10 = pnand %p2932_p9, %p2928_p7 }
  0x68   : > { %2936 = shalt.err (!%p2933_p10)
}
  0x69   : > { %s2937_s14 = scalar_lea.vmem %s3269_s15, 256  ;;  %s3035_s0 = smov [#allocation12]  }
  0x6a   : > { %p2938_p12 = scmp.ne.s32.totalorder %s3269_s15, %s2937_s14  ;;  %s2942_s2 = sshll.u32 %s3035_s0, 4  ;;  %s2943_s2 = int_to_ptr.vmem [resolvable:$false] %s2942_s2 }
  0x6b   : > { %s2944_s24 = scalar_lea.vmem %s2943_s2, 512  ;;  %p2945_p2 = scmp.lt.s32.totalorder %s3269_s15, %s2943_s2 }
  0x6c   : > { %p2940_p3 = pnand %p2938_p12, %p2926_p13  ;;  %p2946_p1 = scmp.lt.s32.totalorder %s2944_s24, %s2937_s14 }
  0x6e   : > { %p2941_p0 = pneg %p2940_p3  ;;  %p2947_p11 = por %p2946_p1, %p2945_p2 }
  0x70   : > { %p2948_p4 = pnand %p2947_p11, %p2941_p0 }
  0x72   : > { %2951 = shalt.err (!%p2948_p4)
}
  0x73   : > { %s3036_s21 = smov 64   ;;  %s3037_s26 = smov 4  }
  0x74   : > { %2644 = dma.hbm_to_vmem [thread:$0]  (!%p3271_p6), %s3267_s27, 256, %s3269_s15, %s3275_s17, %s3036_s21, %s3036_s21, %s3037_s26  }
  0x75   : > { %p3693_p13 = scmp.ne.s32.totalorder %s3681_s23, 0 }
  0x76   : > { %p3694_p3 = scmp.eq.s32.totalorder (!%p3693_p13), %s3153_s22, 0 }
  0x77   : > { %568 = sbr.rel (%p3693_p13) target bundleno = 3231 (0xc9f), region = 80 }
  0x7c   : > { %2993 = dma.done.wait (%p3694_p3), [#allocation4], 256   ;;  %p3695_p7 = pmov %p3694_p3 }
  0x7d   : > { %p3696_p1 = pmov %p3694_p3 }
  0x7e   : > { %2995 = vsyncadd (%p3695_p7), [#allocation4], 4294967040 }
  0x7f   : > { %2997 = dma.done.wait (%p3696_p1), [#allocation7], 512   ;;  %p3697_p4 = pmov %p3696_p1 }
  0x80   : > { %p3698_p11 = pmov %p3696_p1 }
  0x81   : > { %2999 = vsyncadd (%p3697_p4), [#allocation7], 4294966784 }
  0x82   : > { %3001 = dma.done.wait (%p3698_p11), [#allocation10], 512   ;;  %p3699_p6 = pmov %p3696_p1 }
  0x83   : > { %s590_s0 = sand.u32 1, %s3018_s19   ;;  %p3700_p5 = scmp.ne.s32.totalorder %s3690_s30, 0 }
  0x84   : > { %3003 = vsyncadd (%p3699_p6), [#allocation10], 4294966784  ;;  %s3311_s2 = sshll.u32 %s590_s0, 4  ;;  %s591_s23 = scalar_lea.sflag [#allocation13], %s590_s0 }
  0x85   : > { %3005 = dma.done.wait (%p3700_p5), %s591_s23, 256  }
  0x86   : > { %3007 = vsyncadd (%p3700_p5), %s591_s23, 4294967040  ;;  %p663_p8 = scmp.lt.s32.totalorder %s3153_s22, 1  ;;  %p3701_p9 = scmp.ne.s32.totalorder %s3153_s22, 0 }
  0x88   : > { %s3320_s15 = scalar_select %p663_p8, %s3153_s22, 1 }
  0x89   : > { %694 = sbr.rel (%p3701_p9) target bundleno = 144 (0x90), region = 108 }
  0x8a   : > { %s2429_s14 = sshll.u32 %s3320_s15, 5  ;;  %s2430_s24 = sshll.u32 %s3320_s15, 4 }
  0x8b   : > { %s3335_s0 = scalar_lea.vmem %s3661_s7, %s2429_s14  ;;  %s3340_s16 = scalar_lea.vmem %s3662_s8, %s2430_s24 }
  0x8c   : > { %s681_s1 = scalar_lea.vmem %s3663_s9, %s3320_s15  ;;  %s684_s29 = scalar_lea.vmem %s3664_s10, %s3320_s15 }
  0x8d   : > { %s3353_s25 = scalar_lea.vmem %s3666_s12, %s2429_s14 }
  0x8e   : > { %v695_v0 = vld [vmem:[#allocation3] sm:$0xff]  ;;  %vm697_vm0 = vcmask 261120   ;;  %v696_v1 = vld [vmem:[#allocation3 + $0x8] sm:$0xff] }
  0x8f   : > { %698 = vst.msk [vmem:[#allocation2] sm:$0xff] %vm697_vm0, %v695_v0  ;;  %699 = vst.msk [vmem:[#allocation2 + $0x8] sm:$0xff] %vm697_vm0, %v696_v1 }
  0x90 PF: > { %vm704_vm1 = vcmask 261120   ;;  %v2728_v16 = vld [vmem:[%s3335_s0 + $0x14] ss:$8 sps:$4 sm:$0xff]   ;;  %v2730_v17 = vld [vmem:[%s3335_s0 + $0x10] ss:$8 sps:$4 sm:$0xff]   ;;  %v3038_v19 = vmov 0   ;;  %s3702_s14 = scalar_lea.vmem %s3659_s5, %s3320_s15  ;;  %s3703_s26 = scalar_lea.vmem %s3660_s6, %s3320_s15 }
  0x91   : > { %v2731_v18 = vld [vmem:[%s3335_s0 + $0x4] ss:$8 sps:$4 sm:$0xff]   ;;  %788 = vmatprep.subr.bf16.mxu0 %v2728_v16  ;;  %808 = vmatprep.mubr.bf16.mxu0 %v3038_v19  ;;  %v2733_v20 = vld [vmem:[%s3335_s0] ss:$8 sps:$4 sm:$0xff]   ;;  %v857_v21 = vld [vmem:[#allocation11] sm:$0xff]  ;;  %s3039_s3 = smov 96  }
  0x92   : > { %789 = vmatpush1.bf16.msra.mxu0 %v2730_v17  ;;  %v858_v22 = vld [vmem:[#allocation11 + $0x8] sm:$0xff]  ;;  %v823_v23 = vld [vmem:[#allocation8] sm:$0xff]  ;;  %v845_v24 = vld [vmem:[#allocation9] sm:$0xff]  ;;  %s3040_s4 = smov 32   ;;  %s3041_s11 = smov 64   ;;  %v3044_v59 = vmov 0.0  }
  0x93   : > { %790 = vmatprep.subr.bf16.mxu0 %v2731_v18  ;;  %v2383_v33 = vld [vmem:[%s3702_s14] ss:$0 sm:$0xff]  ;;  %v846_v48 = vld [vmem:[#allocation9 + $0x8] sm:$0xff]  ;;  %v824_v50 = vld [vmem:[#allocation8 + $0x8] sm:$0xff]  ;;  %s3042_s0 = smov 120   ;;  %s3043_s23 = smov 104   ;;  %2475 = vmatprep.subr.bf16.mxu1 %v3044_v59 }
  0x94   : > { %v2384_v37 = vld [vmem:[%s3703_s26] ss:$0 sm:$0xff]  ;;  %s3045_s17 = smov 112   ;;  %vm3046_vm2 = vmmov 0   ;;  %vm966_vm3 = vcmask 64512   ;;  %vm1455_vm4 = vcmask 1043456  }
  0x95   : > { %2477 = vmatprep.mubr.msk.bf16.mxu1 %vm3046_vm2, %v3044_v59  ;;  %v819_v0 = vld [vmem:[#allocation6] sm:$0xff]  ;;  %s3047_s18 = smov 8   ;;  %vm1834_vm5 = vcmask 130048   ;;  %vm1836_vm6 = vcmask 195584   ;;  %vm2078_vm7 = vcmask 523264   ;;  %p2421_p10 = scmp.ne.s32.totalorder %s3153_s22, 1 }
  0x96   : > { %v3357_v2 = vld [vmem:[#allocation2] sm:$0xff]  ;;  %v3359_v3 = vld [vmem:[#allocation2 + $0x8] sm:$0xff]  ;;  %791 = vmatpush1.bf16.msra.mxu0 %v2733_v20 }
  0x97   : > { %v705_v4 = vsel %vm704_vm1, %v3357_v2, 0.0  ;;  %v708_v5 = vsel %vm704_vm1, %v3359_v3, 0.0  ;;  %2481 = vmatprep.subr.bf16.mxu0 %v3044_v59 }
  0x98   : > { %706 = vadd.xlane.f32.xlu0 %v705_v4 }
  0x9c   : > { %709 = vadd.xlane.f32.xlu0 %v708_v5 }
  0xb2   : > { %861 = vrot.lane.b32.xlu0 %v857_v21, %s3039_s3 }
  0xb6   : > { %827 = vrot.lane.b32.xlu0 %v823_v23, %s3040_s4 }
 0x121   : > { %v707_v6 = vpop.xlane.xlu0 %706 }
 0x122   : > { %v712_v7 = vmul.f32 0.03125, %v707_v6 }
 0x124   : > { %v714_v8 = vsub.f32 %v3357_v2, %v712_v7 }
 0x125   : > { %v710_v9 = vpop.xlane.xlu0 %709 }
 0x126   : > { %v713_v10 = vmul.f32 0.03125, %v710_v9  ;;  %v716_v11 = vmul.f32 %v714_v8, %v714_v8 }
 0x128   : > { %v715_v12 = vsub.f32 %v3359_v3, %v713_v10  ;;  %v718_v13 = vsel %vm704_vm1, %v716_v11, 0.0 }
 0x129   : > { %719 = vadd.xlane.f32.xlu1 %v718_v13  ;;  %v862_v42 = vpop.permute.xlu0 %861 }
 0x12a   : > { %v717_v14 = vmul.f32 %v715_v12, %v715_v12 }
 0x12c   : > { %v721_v15 = vsel %vm704_vm1, %v717_v14, 0.0 }
 0x12d   : > { %722 = vadd.xlane.f32.xlu1 %v721_v15  ;;  %v828_v51 = vpop.permute.xlu0 %827  ;;  %v820_v15 = vld [vmem:[#allocation6 + $0x8] sm:$0xff] }
 0x13e   : > { %863 = vrot.lane.b32.xlu1 %v858_v22, %s3039_s3 }
 0x142   : > { %849 = vrot.lane.b32.xlu1 %v845_v24, %s3041_s11 }
 0x1b2   : > { %v720_v25 = vpop.xlane.xlu1 %719 }
 0x1b3   : > { %v724_v26 = vmul.f32 0.03125, %v720_v25 }
 0x1b5   : > { %v726_v27 = vadd.f32 1e-05, %v724_v26 }
 0x1b6   : > { %v723_v28 = vpop.xlane.xlu1 %722 }
 0x1b7   : > { %2742 = vrsqrt.f32 %v726_v27  ;;  %v725_v29 = vmul.f32 0.03125, %v723_v28 }
 0x1b9   : > { %v727_v30 = vadd.f32 1e-05, %v725_v29 }
 0x1ba   : > { %v864_v46 = vpop.permute.xlu1 %863 }
 0x1bb   : > { %2744 = vrsqrt.f32 %v727_v30 }
 0x1be   : > { %v850_v53 = vpop.permute.xlu1 %849 }
 0x1c4   : > { %v2743_v31 = vpop.eup %2742 }
 0x1c5   : > { %v730_v32 = vmul.f32 %v2743_v31, %v714_v8 }
 0x1c7   : > { %v738_v36 = vmul.f32 %v2383_v33, %v730_v32 }
 0x1c8   : > { %v2745_v34 = vpop.eup %2744 }
 0x1c9   : > { %v731_v35 = vmul.f32 %v2745_v34, %v715_v12  ;;  %v746_v39 = vadd.f32 %v2384_v37, %v738_v36 }
 0x1cb   : > { %v739_v38 = vmul.f32 %v2383_v33, %v731_v35 }
 0x1cd   : > { %v747_v40 = vadd.f32 %v2384_v37, %v739_v38 }
 0x1cf   : > { %v748_v41 = vpack.c.bf16 %v747_v40, %v746_v39 }
 0x1d1   : > { %2389 = vmatmul.mubr.msk.bf16.vlgmr.msra.gmra.mxu0 %vm704_vm1, %v748_v41 }
 0x1d2   : > { %2483 = vmatprep.mubr.msk.bf16.mxu0 %vm3046_vm2, %v3044_v59 }
 0x291   : > { %v810_v43 = vpop.f32.mrf.mxu0 }
 0x292   : > { %v867_v44 = vmul.f32 %v862_v42, %v810_v43  ;;  %v833_v52 = vmul.f32 %v828_v51, %v810_v43  ;;  %v855_v54 = vmul.f32 %v850_v53, %v810_v43  ;;  %v821_v5 = vmul.f32 %v819_v0, %v810_v43 }
 0x293   : > { %v3388_v45 = vpop.f32.mrf.mxu0 }
 0x294   : > { %871 = vrot.lane.b32.xlu1 %v867_v44, %s3039_s3 }
 0x295   : > { %v3391_v47 = vpop.f32.mrf.mxu0 }
 0x296   : > { %v868_v49 = vmul.f32 %v864_v46, %v3391_v47  ;;  %v822_v20 = vmul.f32 %v820_v15, %v3391_v47 }
 0x298   : > { %873 = vrot.lane.b32.xlu0 %v868_v49, %s3039_s3  ;;  %851 = vrot.lane.b32.xlu1 %v846_v48, %s3041_s11 }
 0x29c   : > { %829 = vrot.lane.b32.xlu1 %v824_v50, %s3040_s4  ;;  %s3049_s4 = smov 16  }
 0x2a0   : > { %837 = vrot.lane.b32.xlu1 %v833_v52, %s3039_s3  ;;  %v955_v52 = vpack.c.bf16 %v3388_v45, %v3388_v45 }
 0x306   : > { %v872_v55 = vpop.permute.xlu1 %871 }
 0x307   : > { %v877_v56 = vadd.f32 %v872_v55, %v855_v54  ;;  %v1457_v55 = vsel %vm1455_vm4, %v955_v52, 0 }
 0x309   : > { %908 = vrot.lane.b32.xlu0 %v877_v56, %s3042_s0  ;;  %914 = vrot.lane.b32.xlu1 %v877_v56, %s3043_s23  ;;  %v927_v1 = vpack.c.bf16 %v877_v56, %v877_v56 }
 0x30a   : > { %v852_v57 = vpop.permute.xlu1 %851  ;;  %v874_v60 = vpop.permute.xlu0 %873 }
 0x30b   : > { %v856_v58 = vmul.f32 %v852_v57, %v3391_v47 }
 0x30d   : > { %911 = vrot.lane.b32.xlu0 %v877_v56, %s3045_s17  ;;  %v878_v62 = vadd.f32 %v874_v60, %v856_v58 }
 0x30e   : > { %v830_v61 = vpop.permute.xlu1 %829 }
 0x30f   : > { %v834_v63 = vmul.f32 %v830_v61, %v3391_v47  ;;  %v931_v19 = vpack.c.bf16 %v878_v62, %v878_v62 }
 0x311   : > { %839 = vrot.lane.b32.xlu1 %v834_v63, %s3039_s3  ;;  %918 = vrot.lane.b32.xlu0 %v878_v62, %s3042_s0  ;;  %v3473_v63 = vpop.f32.mrf.mxu0  ;;  %s3048_s3 = smov 24  }
 0x312   : > { %v838_v4 = vpop.permute.xlu1 %837 }
 0x313   : > { %v843_v6 = vadd.f32 %v838_v4, %v821_v5 }
 0x315   : > { %924 = vrot.lane.b32.xlu1 %v878_v62, %s3043_s23  ;;  %921 = vrot.lane.b32.xlu0 %v878_v62, %s3045_s17  ;;  %v899_v26 = vpack.c.bf16 %v843_v6, %v843_v6 }
 0x319   : > { %964 = vrot.lane.b32.xlu0 %v927_v1, %s3041_s11 }
 0x31d   : > { %880 = vrot.lane.b32.xlu0 %v843_v6, %s3042_s0 }
 0x37b   : > { %v915_v7 = vpop.permute.xlu1 %914  ;;  %v909_v8 = vpop.permute.xlu0 %908 }
 0x37c   : > { %v930_v9 = vpack.c.bf16 %v915_v7, %v915_v7  ;;  %v928_v10 = vpack.c.bf16 %v909_v8, %v909_v8 }
 0x37e   : > { %1112 = vrot.lane.b32.xlu0 %v930_v9, %s3041_s11  ;;  %1014 = vrot.lane.b32.xlu1 %v928_v10, %s3041_s11 }
 0x37f   : > { %v912_v11 = vpop.permute.xlu0 %911 }
 0x380   : > { %v929_v12 = vpack.c.bf16 %v912_v11, %v912_v11 }
 0x382   : > { %886 = vrot.lane.b32.xlu0 %v843_v6, %s3043_s23  ;;  %1063 = vrot.lane.b32.xlu1 %v929_v12, %s3041_s11 }
 0x383   : > { %v919_v13 = vpop.permute.xlu0 %918  ;;  %v840_v16 = vpop.permute.xlu1 %839 }
 0x384   : > { %v932_v14 = vpack.c.bf16 %v919_v13, %v919_v13  ;;  %v844_v22 = vadd.f32 %v840_v16, %v822_v20 }
 0x386   : > { %883 = vrot.lane.b32.xlu1 %v843_v6, %s3045_s17  ;;  %1210 = vrot.lane.b32.xlu0 %v932_v14, %s3041_s11  ;;  %v903_v46 = vpack.c.bf16 %v844_v22, %v844_v22 }
 0x387   : > { %v922_v17 = vpop.permute.xlu0 %921  ;;  %v925_v24 = vpop.permute.xlu1 %924 }
 0x388   : > { %v933_v18 = vpack.c.bf16 %v922_v17, %v922_v17  ;;  %v934_v25 = vpack.c.bf16 %v925_v24, %v925_v24 }
 0x38a   : > { %1161 = vrot.lane.b32.xlu1 %v931_v19, %s3041_s11  ;;  %1259 = vrot.lane.b32.xlu0 %v933_v18, %s3041_s11 }
 0x38b   : > { %v965_v21 = vpop.permute.xlu0 %964 }
 0x38c   : > { %v971_v23 = vsel %vm966_vm3, %v965_v21, 0 }
 0x38d   : > { %2476 = vmatpush3.bf16.xpose.msra.mxu1 %v971_v23 }
 0x38e   : > { %890 = vrot.lane.b32.xlu1 %v844_v22, %s3042_s0  ;;  %893 = vrot.lane.b32.xlu0 %v844_v22, %s3045_s17 }
 0x38f   : > { %2487 = vmatprep.subr.bf16.mxu1 %v3044_v59  ;;  %v881_v27 = vpop.permute.xlu0 %880 }
 0x390   : > { %v900_v34 = vpack.c.bf16 %v881_v27, %v881_v27 }
 0x392   : > { %1308 = vrot.lane.b32.xlu1 %v934_v25, %s3041_s11 }
 0x394   : > { %2478 = vmatmul.mubr.msk.bf16.vlgmr.msra.gmra.mxu1 %vm966_vm3, %v899_v26 }
 0x395   : > { %2489 = vmatprep.mubr.msk.bf16.mxu1 %vm3046_vm2, %v3044_v59 }
 0x396   : > { %896 = vrot.lane.b32.xlu1 %v844_v22, %s3043_s23 }
 0x3f0   : > { %v1015_v28 = vpop.permute.xlu1 %1014  ;;  %v1113_v29 = vpop.permute.xlu0 %1112 }
 0x3f1   : > { %v1020_v30 = vsel %vm966_vm3, %v1015_v28, 0  ;;  %v1118_v36 = vsel %vm966_vm3, %v1113_v29, 0 }
 0x3f2   : > { %2482 = vmatpush3.bf16.xpose.msra.mxu0 %v1020_v30 }
 0x3f3   : > { %2493 = vmatprep.subr.bf16.mxu0 %v3044_v59 }
 0x3f4   : > { %v1064_v31 = vpop.permute.xlu1 %1063  ;;  %v887_v33 = vpop.permute.xlu0 %886 }
 0x3f5   : > { %v1069_v32 = vsel %vm966_vm3, %v1064_v31, 0  ;;  %v902_v41 = vpack.c.bf16 %v887_v33, %v887_v33 }
 0x3f6   : > { %2488 = vmatpush3.bf16.xpose.msra.mxu1 %v1069_v32 }
 0x3f7   : > { %2499 = vmatprep.subr.bf16.mxu1 %v3044_v59 }
 0x3f8   : > { %v884_v35 = vpop.permute.xlu1 %883  ;;  %v1211_v38 = vpop.permute.xlu0 %1210 }
 0x3f9   : > { %2484 = vmatmul.mubr.msk.bf16.vlgmr.msra.gmra.mxu0 %vm966_vm3, %v900_v34  ;;  %v901_v37 = vpack.c.bf16 %v884_v35, %v884_v35  ;;  %v1216_v43 = vsel %vm966_vm3, %v1211_v38, 0 }
 0x3fa   : > { %2494 = vmatpush3.bf16.xpose.msra.mxu0 %v1118_v36  ;;  %2495 = vmatprep.mubr.msk.bf16.mxu0 %vm3046_vm2, %v3044_v59 }
 0x3fb   : > { %2505 = vmatprep.subr.bf16.mxu0 %v3044_v59 }
 0x3fc   : > { %v1162_v39 = vpop.permute.xlu1 %1161  ;;  %v1260_v44 = vpop.permute.xlu0 %1259 }
 0x3fd   : > { %v1167_v40 = vsel %vm966_vm3, %v1162_v39, 0  ;;  %2490 = vmatmul.mubr.msk.bf16.vlgmr.msra.gmra.mxu1 %vm966_vm3, %v901_v37  ;;  %v1265_v47 = vsel %vm966_vm3, %v1260_v44, 0 }
 0x3fe   : > { %2500 = vmatpush3.bf16.xpose.msra.mxu1 %v1167_v40  ;;  %2501 = vmatprep.mubr.msk.bf16.mxu1 %vm3046_vm2, %v3044_v59 }
 0x3ff   : > { %2511 = vmatprep.subr.bf16.mxu1 %v3044_v59 }
 0x400   : > { %v891_v42 = vpop.permute.xlu1 %890  ;;  %v894_v50 = vpop.permute.xlu0 %893 }
 0x401   : > { %2496 = vmatmul.mubr.msk.bf16.vlgmr.msra.gmra.mxu0 %vm966_vm3, %v902_v41  ;;  %v904_v49 = vpack.c.bf16 %v891_v42, %v891_v42  ;;  %v905_v53 = vpack.c.bf16 %v894_v50, %v894_v50 }
 0x402   : > { %2506 = vmatpush3.bf16.xpose.msra.mxu0 %v1216_v43  ;;  %2507 = vmatprep.mubr.msk.bf16.mxu0 %vm3046_vm2, %v3044_v59 }
 0x403   : > { %2517 = vmatprep.subr.bf16.mxu0 %v3044_v59 }
 0x404   : > { %v1309_v48 = vpop.permute.xlu1 %1308 }
 0x405   : > { %2502 = vmatmul.mubr.msk.bf16.vlgmr.msra.gmra.mxu1 %vm966_vm3, %v903_v46  ;;  %v1314_v51 = vsel %vm966_vm3, %v1309_v48, 0 }
 0x406   : > { %2512 = vmatpush3.bf16.xpose.msra.mxu1 %v1265_v47  ;;  %2513 = vmatprep.mubr.msk.bf16.mxu1 %vm3046_vm2, %v3044_v59 }
 0x407   : > { %2523 = vmatprep.subr.bf16.mxu1 %v3044_v59 }
 0x408   : > { %v897_v54 = vpop.permute.xlu1 %896 }
 0x409   : > { %2508 = vmatmul.mubr.msk.bf16.vlgmr.msra.gmra.mxu0 %vm966_vm3, %v904_v49  ;;  %v906_v56 = vpack.c.bf16 %v897_v54, %v897_v54 }
 0x40a   : > { %2518 = vmatpush3.bf16.xpose.msra.mxu0 %v1314_v51  ;;  %2519 = vmatprep.mubr.msk.bf16.mxu0 %vm3046_vm2, %v3044_v59 }
 0x40b   : > { %2529 = vmatprep.subr.bf16.mxu0 %v3044_v59 }
 0x40d   : > { %2514 = vmatmul.mubr.msk.bf16.vlgmr.msra.gmra.mxu1 %vm966_vm3, %v905_v53 }
 0x40e   : > { %2524 = vmatpush3.bf16.msra.mxu1 %v1457_v55  ;;  %2525 = vmatprep.mubr.msk.bf16.mxu1 %vm3046_vm2, %v3044_v59 }
 0x40f   : > { %2535 = vmatprep.subr.bf16.mxu1 %v3044_v59 }
 0x411   : > { %2520 = vmatmul.mubr.msk.bf16.vlgmr.msra.gmra.mxu0 %vm966_vm3, %v906_v56 }
 0x412   : > { %2531 = vmatprep.mubr.msk.bf16.mxu0 %vm3046_vm2, %v3044_v59 }
 0x454   : > { %v1007_v57 = vpop.f32.mrf.mxu1 }
 0x455   : > { %v1356_v58 = vsel %vm966_vm3, %v1007_v57, -inf }
 0x456   : > { %1357 = vmax.xlane.f32.xlu0 %v1356_v58  ;;  %v2479_v60 = vpop.f32.mrf.mxu1 }
 0x458   : > { %v1010_v61 = vpop.f32.mrf.mxu1 }
 0x45a   : > { %v2480_v62 = vpop.f32.mrf.mxu1 }
 0x4b9   : > { %v1056_v0 = vpop.f32.mrf.mxu0 }
 0x4ba   : > { %v1359_v1 = vsel %vm966_vm3, %v1056_v0, -inf }
 0x4bb   : > { %1360 = vmax.xlane.f32.xlu1 %v1359_v1  ;;  %v2485_v4 = vpop.f32.mrf.mxu0 }
 0x4bd   : > { %v1059_v5 = vpop.f32.mrf.mxu0  ;;  %v1105_v6 = vpop.f32.mrf.mxu1 }
 0x4be   : > { %v1362_v7 = vsel %vm966_vm3, %v1105_v6, -inf }
 0x4bf   : > { %1363 = vmax.xlane.f32.xlu0 %v1362_v7  ;;  %v2486_v8 = vpop.f32.mrf.mxu0  ;;  %v2491_v9 = vpop.f32.mrf.mxu1 }
 0x4c1   : > { %v1108_v10 = vpop.f32.mrf.mxu1  ;;  %v1154_v11 = vpop.f32.mrf.mxu0 }
 0x4c2   : > { %v1365_v12 = vsel %vm966_vm3, %v1154_v11, -inf }
 0x4c3   : > { %v2492_v13 = vpop.f32.mrf.mxu1  ;;  %1366 = vmax.xlane.f32.xlu0 %v1365_v12  ;;  %v2497_v14 = vpop.f32.mrf.mxu0 }
 0x4c5   : > { %v1157_v15 = vpop.f32.mrf.mxu0  ;;  %v1203_v16 = vpop.f32.mrf.mxu1 }
 0x4c6   : > { %v1368_v17 = vsel %vm966_vm3, %v1203_v16, -inf }
 0x4c7   : > { %v2503_v18 = vpop.f32.mrf.mxu1  ;;  %1369 = vmax.xlane.f32.xlu0 %v1368_v17  ;;  %v2498_v19 = vpop.f32.mrf.mxu0 }
 0x4c9   : > { %v1206_v20 = vpop.f32.mrf.mxu1  ;;  %v1252_v21 = vpop.f32.mrf.mxu0 }
 0x4ca   : > { %v1371_v22 = vsel %vm966_vm3, %v1252_v21, -inf }
 0x4cb   : > { %v2504_v23 = vpop.f32.mrf.mxu1  ;;  %1372 = vmax.xlane.f32.xlu1 %v1371_v22  ;;  %v2509_v24 = vpop.f32.mrf.mxu0 }
 0x4cd   : > { %v1255_v25 = vpop.f32.mrf.mxu0  ;;  %v1301_v26 = vpop.f32.mrf.mxu1 }
 0x4ce   : > { %v1374_v27 = vsel %vm966_vm3, %v1301_v26, -inf }
 0x4cf   : > { %v2510_v28 = vpop.f32.mrf.mxu0  ;;  %1375 = vmax.xlane.f32.xlu0 %v1374_v27  ;;  %v2515_v29 = vpop.f32.mrf.mxu1 }
 0x4d1   : > { %v1304_v30 = vpop.f32.mrf.mxu1  ;;  %v1350_v31 = vpop.f32.mrf.mxu0 }
 0x4d2   : > { %v1377_v32 = vsel %vm966_vm3, %v1350_v31, -inf }
 0x4d3   : > { %1378 = vmax.xlane.f32.xlu1 %v1377_v32  ;;  %v2516_v33 = vpop.f32.mrf.mxu1  ;;  %v2521_v34 = vpop.f32.mrf.mxu0 }
 0x4d5   : > { %v1353_v35 = vpop.f32.mrf.mxu0 }
 0x4d7   : > { %v2522_v36 = vpop.f32.mrf.mxu0 }
 0x4df   : > { %v1358_v37 = vpop.xlane.xlu0 %1357 }
 0x4e0   : > { %v1380_v38 = vsub.f32 %v1007_v57, %v1358_v37 }
 0x4e2   : > { %v1388_v39 = vmul.f32 1.442695, %v1380_v38 }
 0x4e4   : > { %2746 = vpow2.f32 %v1388_v39  ;;  %936 = vrot.lane.b32.xlu1 %v3388_v45, %s3042_s0 }
 0x4f1   : > { %v3484_v40 = vpop.eup %2746 }
 0x4f2   : > { %v1404_v41 = vsel %vm966_vm3, %v3484_v40, 0.0 }
 0x4f3   : > { %1405 = vadd.xlane.f32.xlu0 %v1404_v41 }
 0x544   : > { %v1361_v42 = vpop.xlane.xlu1 %1360 }
 0x545   : > { %v1381_v43 = vsub.f32 %v1056_v0, %v1361_v42 }
 0x547   : > { %v1390_v44 = vmul.f32 1.442695, %v1381_v43 }
 0x548   : > { %v1364_v46 = vpop.xlane.xlu0 %1363 }
 0x549   : > { %2748 = vpow2.f32 %v1390_v44  ;;  %v1382_v47 = vsub.f32 %v1105_v6, %v1364_v46 }
 0x54b   : > { %v1392_v48 = vmul.f32 1.442695, %v1382_v47 }
 0x54c   : > { %v1367_v49 = vpop.xlane.xlu0 %1366 }
 0x54d   : > { %2750 = vpow2.f32 %v1392_v48  ;;  %v1383_v50 = vsub.f32 %v1154_v11, %v1367_v49 }
 0x54f   : > { %v1394_v51 = vmul.f32 1.442695, %v1383_v50 }
 0x550   : > { %v1370_v52 = vpop.xlane.xlu0 %1369 }
 0x551   : > { %2752 = vpow2.f32 %v1394_v51  ;;  %v1384_v53 = vsub.f32 %v1203_v16, %v1370_v52  ;;  %v959_v52 = vpack.c.bf16 %v3473_v63, %v3473_v63 }
 0x553   : > { %v1396_v54 = vmul.f32 1.442695, %v1384_v53 }
 0x554   : > { %v1373_v55 = vpop.xlane.xlu1 %1372 }
 0x555   : > { %2754 = vpow2.f32 %v1396_v54  ;;  %v1385_v56 = vsub.f32 %v1252_v21, %v1373_v55 }
 0x556   : > { %v2749_v57 = vpop.eup %2748 }
 0x557   : > { %v1398_v58 = vmul.f32 1.442695, %v1385_v56  ;;  %v1407_v60 = vsel %vm966_vm3, %v2749_v57, 0.0 }
 0x558   : > { %1408 = vadd.xlane.f32.xlu1 %v1407_v60  ;;  %v1376_v61 = vpop.xlane.xlu0 %1375  ;;  %v1641_v60 = vsel %vm1455_vm4, %v959_v52, 0 }
 0x559   : > { %2756 = vpow2.f32 %v1398_v58  ;;  %v1386_v62 = vsub.f32 %v1301_v26, %v1376_v61 }
 0x55a   : > { %v3489_v0 = vpop.eup %2750 }
 0x55b   : > { %v1400_v1 = vmul.f32 1.442695, %v1386_v62  ;;  %v1410_v4 = vsel %vm966_vm3, %v3489_v0, 0.0 }
 0x55c   : > { %v1379_v5 = vpop.xlane.xlu1 %1378  ;;  %1411 = vadd.xlane.f32.xlu0 %v1410_v4 }
 0x55d   : > { %2758 = vpow2.f32 %v1400_v1  ;;  %v1387_v6 = vsub.f32 %v1350_v31, %v1379_v5 }
 0x55e   : > { %v2753_v7 = vpop.eup %2752 }
 0x55f   : > { %v1402_v8 = vmul.f32 1.442695, %v1387_v6  ;;  %v1413_v9 = vsel %vm966_vm3, %v2753_v7, 0.0 }
 0x560   : > { %v937_v10 = vpop.permute.xlu1 %936  ;;  %1414 = vadd.xlane.f32.xlu1 %v1413_v9 }
 0x561   : > { %2760 = vpow2.f32 %v1402_v8  ;;  %v956_v11 = vpack.c.bf16 %v937_v10, %v937_v10 }
 0x562   : > { %v3494_v12 = vpop.eup %2754 }
 0x563   : > { %v1503_v13 = vsel %vm1455_vm4, %v956_v11, 0  ;;  %v1416_v14 = vsel %vm966_vm3, %v3494_v12, 0.0 }
 0x564   : > { %2530 = vmatpush3.bf16.msra.mxu0 %v1503_v13  ;;  %1417 = vadd.xlane.f32.xlu0 %v1416_v14 }
 0x565   : > { %2541 = vmatprep.subr.bf16.mxu0 %v3044_v59 }
 0x566   : > { %v2757_v15 = vpop.eup %2756 }
 0x567   : > { %v1419_v16 = vsel %vm966_vm3, %v2757_v15, 0.0 }
 0x568   : > { %1420 = vadd.xlane.f32.xlu1 %v1419_v16 }
 0x56a   : > { %v3501_v17 = vpop.eup %2758 }
 0x56b   : > { %v1422_v18 = vsel %vm966_vm3, %v3501_v17, 0.0 }
 0x56c   : > { %1423 = vadd.xlane.f32.xlu0 %v1422_v18 }
 0x56e   : > { %v3505_v19 = vpop.eup %2760 }
 0x56f   : > { %v1425_v20 = vsel %vm966_vm3, %v3505_v19, 0.0 }
 0x570   : > { %1426 = vadd.xlane.f32.xlu0 %v1425_v20 }
 0x579   : > { %942 = vrot.lane.b32.xlu1 %v3388_v45, %s3043_s23 }
 0x57c   : > { %v1406_v21 = vpop.xlane.xlu0 %1405 }
 0x57d   : > { %2762 = vrcp.f32 %v1406_v21  ;;  %946 = vrot.lane.b32.xlu1 %v3473_v63, %s3042_s0  ;;  %v2734_v21 = vld [vmem:[%s3340_s16 + $0x8] sm:$0xff]  }
 0x581   : > { %949 = vrot.lane.b32.xlu1 %v3473_v63, %s3045_s17 }
 0x585   : > { %952 = vrot.lane.b32.xlu1 %v3473_v63, %s3043_s23 }
 0x586   : > { %939 = vrot.lane.b32.xlu0 %v3388_v45, %s3045_s17 }
 0x58a   : > { %v2763_v22 = vpop.eup %2762 }
 0x58b   : > { %v1436_v23 = vmul.f32 %v2763_v22, %v3484_v40 }
 0x58d   : > { %v1444_v24 = vpack.c.bf16 %v1436_v23, %v1436_v23 }
 0x58f   : > { %2526 = vmatmul.mubr.msk.bf16.vlgmr.msra.gmra.mxu1 %vm966_vm3, %v1444_v24 }
 0x590   : > { %2537 = vmatprep.mubr.msk.bf16.mxu1 %vm3046_vm2, %v3044_v59 }
 0x5e1   : > { %v1409_v25 = vpop.xlane.xlu1 %1408 }
 0x5e2   : > { %2764 = vrcp.f32 %v1409_v25 }
 0x5e5   : > { %v1412_v27 = vpop.xlane.xlu0 %1411 }
 0x5e9   : > { %v1415_v26 = vpop.xlane.xlu1 %1414 }
 0x5ea   : > { %2766 = vrcp.f32 %v1415_v26 }
 0x5eb   : > { %2768 = vrcp.f32 %v1412_v27 }
 0x5ed   : > { %v1418_v30 = vpop.xlane.xlu0 %1417 }
 0x5ef   : > { %v2765_v28 = vpop.eup %2764 }
 0x5f0   : > { %v1437_v29 = vmul.f32 %v2765_v28, %v2749_v57 }
 0x5f1   : > { %v1421_v31 = vpop.xlane.xlu1 %1420 }
 0x5f2   : > { %2770 = vrcp.f32 %v1421_v31  ;;  %v1445_v45 = vpack.c.bf16 %v1437_v29, %v1437_v29 }
 0x5f3   : > { %2772 = vrcp.f32 %v1418_v30 }
 0x5f4   : > { %2532 = vmatmul.mubr.msk.bf16.vlgmr.msra.gmra.mxu0 %vm966_vm3, %v1445_v45 }
 0x5f5   : > { %v943_v32 = vpop.permute.xlu1 %942  ;;  %v1424_v33 = vpop.xlane.xlu0 %1423  ;;  %2543 = vmatprep.mubr.msk.bf16.mxu0 %vm3046_vm2, %v3044_v59 }
 0x5f6   : > { %v958_v34 = vpack.c.bf16 %v943_v32, %v943_v32  ;;  %v2735_v32 = vld [vmem:[%s3340_s16] sm:$0xff]   ;;  %s3704_s16 = scalar_lea.vmem [#allocation12], %s3311_s2 }
 0x5f7   : > { %v2767_v35 = vpop.eup %2766  ;;  %s3705_s27 = smov %s3704_s16 }
 0x5f8   : > { %v1595_v36 = vsel %vm1455_vm4, %v958_v34, 0  ;;  %v1439_v37 = vmul.f32 %v2767_v35, %v2753_v7  ;;  %v2769_v42 = vpop.eup %2768 }
 0x5f9   : > { %2542 = vmatpush3.bf16.msra.mxu0 %v1595_v36  ;;  %v947_v38 = vpop.permute.xlu1 %946  ;;  %v1427_v39 = vpop.xlane.xlu0 %1426  ;;  %v1438_v48 = vmul.f32 %v2769_v42, %v3489_v0 }
 0x5fa   : > { %v960_v40 = vpack.c.bf16 %v947_v38, %v947_v38  ;;  %2774 = vrcp.f32 %v1427_v39  ;;  %v1447_v41 = vpack.c.bf16 %v1439_v37, %v1439_v37  ;;  %2553 = vmatprep.subr.bf16.mxu0 %v3044_v59 }
 0x5fb   : > { %2776 = vrcp.f32 %v1424_v33  ;;  %v1446_v55 = vpack.c.bf16 %v1438_v48, %v1438_v48 }
 0x5fc   : > { %v1687_v43 = vsel %vm1455_vm4, %v960_v40, 0  ;;  %2544 = vmatmul.mubr.msk.bf16.vlgmr.msra.gmra.mxu0 %vm966_vm3, %v1447_v41 }
 0x5fd   : > { %2554 = vmatpush3.bf16.msra.mxu0 %v1687_v43  ;;  %v950_v44 = vpop.permute.xlu1 %949  ;;  %v940_v46 = vpop.permute.xlu0 %939  ;;  %2555 = vmatprep.mubr.msk.bf16.mxu0 %vm3046_vm2, %v3044_v59 }
 0x5fe   : > { %v957_v47 = vpack.c.bf16 %v940_v46, %v940_v46  ;;  %2565 = vmatprep.subr.bf16.mxu0 %v3044_v59  ;;  %v961_v62 = vpack.c.bf16 %v950_v44, %v950_v44 }
 0x5ff   : > { %v2771_v49 = vpop.eup %2770 }
 0x600   : > { %v1549_v50 = vsel %vm1455_vm4, %v957_v47, 0  ;;  %v1441_v51 = vmul.f32 %v2771_v49, %v2757_v15  ;;  %v2773_v57 = vpop.eup %2772  ;;  %v1733_v6 = vsel %vm1455_vm4, %v961_v62, 0 }
 0x601   : > { %v953_v53 = vpop.permute.xlu1 %952  ;;  %2536 = vmatpush3.bf16.msra.mxu1 %v1549_v50  ;;  %v1440_v63 = vmul.f32 %v2773_v57, %v3494_v12 }
 0x602   : > { %v962_v54 = vpack.c.bf16 %v953_v53, %v953_v53  ;;  %2547 = vmatprep.subr.bf16.mxu1 %v3044_v59  ;;  %v1449_v56 = vpack.c.bf16 %v1441_v51, %v1441_v51 }
 0x603   : > { %v1448_v1 = vpack.c.bf16 %v1440_v63, %v1440_v63 }
 0x604   : > { %v1779_v58 = vsel %vm1455_vm4, %v962_v54, 0  ;;  %2538 = vmatmul.mubr.msk.bf16.vlgmr.msra.gmra.mxu1 %vm966_vm3, %v1446_v55  ;;  %2556 = vmatmul.mubr.msk.bf16.vlgmr.msra.gmra.mxu0 %vm966_vm3, %v1449_v56 }
 0x605   : > { %2548 = vmatpush3.bf16.msra.mxu1 %v1641_v60  ;;  %2566 = vmatpush3.bf16.msra.mxu0 %v1779_v58 }
 0x606   : > { %2549 = vmatprep.mubr.msk.bf16.mxu1 %vm3046_vm2, %v3044_v59  ;;  %2559 = vmatprep.subr.bf16.mxu1 %v3044_v59 }
 0x607   : > { %v2775_v61 = vpop.eup %2774  ;;  %2567 = vmatprep.mubr.msk.bf16.mxu0 %vm3046_vm2, %v3044_v59  ;;  %2579 = vmatprep.subr.bf16.mxu0 %v3044_v59 }
 0x608   : > { %v1443_v0 = vmul.f32 %v2775_v61, %v3505_v19  ;;  %v2777_v5 = vpop.eup %2776 }
 0x609   : > { %v1442_v7 = vmul.f32 %v2777_v5, %v3501_v17 }
 0x60a   : > { %v1451_v4 = vpack.c.bf16 %v1443_v0, %v1443_v0 }
 0x60b   : > { %v1450_v8 = vpack.c.bf16 %v1442_v7, %v1442_v7 }
 0x60c   : > { %2550 = vmatmul.mubr.msk.bf16.vlgmr.msra.gmra.mxu1 %vm966_vm3, %v1448_v1  ;;  %2568 = vmatmul.mubr.msk.bf16.vlgmr.msra.gmra.mxu0 %vm966_vm3, %v1451_v4 }
 0x60d   : > { %2560 = vmatpush3.bf16.msra.mxu1 %v1733_v6  ;;  %2561 = vmatprep.mubr.msk.bf16.mxu1 %vm3046_vm2, %v3044_v59 }
 0x60e   : > { %2571 = vmatprep.subr.bf16.mxu1 %v3044_v59  ;;  %2583 = vmatprep.mubr.msk.bf16.mxu0 %vm3046_vm2, %v3044_v59 }
 0x614   : > { %2562 = vmatmul.mubr.msk.bf16.vlgmr.msra.gmra.mxu1 %vm966_vm3, %v1450_v8 }
 0x615   : > { %2575 = vmatprep.mubr.msk.bf16.mxu1 %vm3046_vm2, %v3044_v59  ;;  %2572 = vmatpush3.bf16.msra.mxu1 %v2734_v21 }
 0x616   : > { %2573 = vmatprep.subr.bf16.mxu1 %v3044_v59 }
 0x619   : > { %2574 = vmatpush3.bf16.msra.mxu1 %v2735_v32 }
 0x61a   : > { %2587 = vmatprep.subr.bf16.mxu1 %v3044_v59 }
 0x64f   : > { %v1493_v9 = vpop.f32.mrf.mxu1 }
 0x651   : > { %v2527_v10 = vpop.f32.mrf.mxu1 }
 0x653   : > { %v1496_v11 = vpop.f32.mrf.mxu1 }
 0x655   : > { %v2528_v12 = vpop.f32.mrf.mxu1 }
 0x6b4   : > { %v1539_v13 = vpop.f32.mrf.mxu0 }
 0x6b6   : > { %v2533_v14 = vpop.f32.mrf.mxu0 }
 0x6b8   : > { %v1542_v15 = vpop.f32.mrf.mxu0 }
 0x6ba   : > { %v2534_v16 = vpop.f32.mrf.mxu0 }
 0x6bc   : > { %v1631_v17 = vpop.f32.mrf.mxu0 }
 0x6be   : > { %v2545_v18 = vpop.f32.mrf.mxu0 }
 0x6bf   : > { %v2737_v18 = vld [vmem:[%s3705_s27] sm:$0xff]  }
 0x6c0   : > { %v1634_v19 = vpop.f32.mrf.mxu0 }
 0x6c2   : > { %v2546_v20 = vpop.f32.mrf.mxu0 }
 0x6c4   : > { %v1585_v22 = vpop.f32.mrf.mxu1  ;;  %v1723_v23 = vpop.f32.mrf.mxu0 }
 0x6c5   : > { %v2713_v24 = vpack.i.bf16 %v1723_v23, %v1539_v13 }
 0x6c6   : > { %v2539_v25 = vpop.f32.mrf.mxu1  ;;  %v2557_v26 = vpop.f32.mrf.mxu0 }
 0x6c7   : > { %2714 = vrot.lane.b32.xlu0 %v2713_v24, %s3047_s18 }
 0x6c8   : > { %v1588_v27 = vpop.f32.mrf.mxu1  ;;  %v1726_v28 = vpop.f32.mrf.mxu0 }
 0x6c9   : > { %v2409_v27 = vld [vmem:[%s681_s1] ss:$0 sm:$0xff] }
 0x6ca   : > { %v2540_v29 = vpop.f32.mrf.mxu1  ;;  %v2558_v30 = vpop.f32.mrf.mxu0 }
 0x6cc   : > { %v1677_v31 = vpop.f32.mrf.mxu1  ;;  %v1815_v45 = vpop.f32.mrf.mxu0 }
 0x6cd   : > { %v2723_v33 = vpack.i.bf16 %v1815_v45, %v1631_v17  ;;  %v2736_v17 = vld [vmem:[%s3704_s16 + $0x8] sm:$0xff]  }
 0x6ce   : > { %v2551_v34 = vpop.f32.mrf.mxu1  ;;  %v2569_v35 = vpop.f32.mrf.mxu0  ;;  %2580 = vmatpush3.bf16.msra.mxu0 %v2736_v17 }
 0x6cf   : > { %2724 = vrot.lane.b32.xlu0 %v2723_v33, %s3048_s3  ;;  %2581 = vmatprep.subr.bf16.mxu0 %v3044_v59  ;;  %v2738_v35 = vld [vmem:[%s3353_s25 + $0x18] sm:$0xff]  }
 0x6d0   : > { %v1680_v36 = vpop.f32.mrf.mxu1  ;;  %v1818_v37 = vpop.f32.mrf.mxu0 }
 0x6d1   : > { %v2739_v36 = vld [vmem:[%s3353_s25 + $0x10] sm:$0xff]   ;;  %v2740_v37 = vld [vmem:[%s3353_s25 + $0x8] sm:$0xff]  }
 0x6d2   : > { %v2552_v38 = vpop.f32.mrf.mxu1  ;;  %v2570_v39 = vpop.f32.mrf.mxu0  ;;  %2582 = vmatpush3.bf16.msra.mxu0 %v2737_v18 }
 0x6d3   : > { %v2741_v38 = vld [vmem:[%s3353_s25] sm:$0xff]  }
 0x6d4   : > { %v1769_v40 = vpop.f32.mrf.mxu1 }
 0x6d5   : > { %v2718_v41 = vpack.i.bf16 %v1769_v40, %v1585_v22 }
 0x6d6   : > { %v2563_v42 = vpop.f32.mrf.mxu1 }
 0x6d7   : > { %2719 = vrot.lane.b32.xlu1 %v2718_v41, %s3049_s4 }
 0x6d8   : > { %v1772_v43 = vpop.f32.mrf.mxu1 }
 0x6da   : > { %v2564_v44 = vpop.f32.mrf.mxu1 }
 0x739   : > { %v2715_v46 = vpop.permute.xlu0 %2714 }
 0x73a   : > { %v2717_v47 = vunpack.i.h.bf16 %v2715_v46  ;;  %v2716_v48 = vunpack.i.l.bf16 %v2715_v46 }
 0x73c   : > { %v1850_v53 = vsel %vm966_vm3, %v1677_v31, %v2717_v47  ;;  %v1833_v54 = vsel %vm966_vm3, %v1493_v9, %v2716_v48  ;;  %v2410_v31 = vld [vmem:[%s684_s29] ss:$0 sm:$0xff] }
 0x741   : > { %v2725_v49 = vpop.permute.xlu0 %2724 }
 0x742   : > { %v2727_v55 = vunpack.i.h.bf16 %v2725_v49  ;;  %v2726_v56 = vunpack.i.l.bf16 %v2725_v49 }
 0x749   : > { %v2720_v50 = vpop.permute.xlu1 %2719 }
 0x74a   : > { %v2722_v51 = vunpack.i.h.bf16 %v2720_v50  ;;  %v2721_v52 = vunpack.i.l.bf16 %v2720_v50 }
 0x74c   : > { %v1835_v57 = vsel %vm1834_vm5, %v1833_v54, %v2721_v52  ;;  %v1851_v58 = vsel %vm1834_vm5, %v1850_v53, %v2722_v51 }
 0x74d   : > { %v1837_v60 = vsel %vm1836_vm6, %v1835_v57, %v2726_v56  ;;  %v1852_v63 = vsel %vm1836_vm6, %v1851_v58, %v2727_v55 }
 0x74e   : > { %v1853_v61 = vpack.c.bf16 %v1852_v63, %v1837_v60 }
 0x750   : > { %2576 = vmatmul.mubr.msk.bf16.vlgmr.msra.gmra.mxu1 %vm704_vm1, %v1853_v61 }
 0x751   : > { %2595 = vmatprep.mubr.msk.bf16.mxu1 %vm3046_vm2, %v3044_v59  ;;  %2588 = vmatpush3.bf16.msra.mxu1 %v2738_v35 }
 0x752   : > { %2589 = vmatprep.subr.bf16.mxu1 %v3044_v59 }
 0x755   : > { %2590 = vmatpush3.bf16.msra.mxu1 %v2739_v36 }
 0x756   : > { %2591 = vmatprep.subr.bf16.mxu1 %v3044_v59 }
 0x759   : > { %2592 = vmatpush3.bf16.msra.mxu1 %v2740_v37 }
 0x75a   : > { %2593 = vmatprep.subr.bf16.mxu1 %v3044_v59 }
 0x75d   : > { %2594 = vmatpush3.bf16.msra.mxu1 %v2741_v38 }
 0x810   : > { %v1907_v62 = vpop.f32.mrf.mxu1 }
 0x811   : > { %v3573_v0 = vadd.f32 %v1907_v62, %v3357_v2 }
 0x812   : > { %v2577_v1 = vpop.f32.mrf.mxu1 }
 0x813   : > { %v1918_v4 = vsel %vm704_vm1, %v3573_v0, 0.0 }
 0x814   : > { %1919 = vadd.xlane.f32.xlu1 %v1918_v4  ;;  %v1910_v5 = vpop.f32.mrf.mxu1 }
 0x815   : > { %v3578_v6 = vadd.f32 %v1910_v5, %v3359_v3 }
 0x816   : > { %v2578_v7 = vpop.f32.mrf.mxu1 }
 0x817   : > { %v1921_v8 = vsel %vm704_vm1, %v3578_v6, 0.0 }
 0x818   : > { %1922 = vadd.xlane.f32.xlu0 %v1921_v8 }
 0x89d   : > { %v1920_v9 = vpop.xlane.xlu1 %1919 }
 0x89e   : > { %v1924_v10 = vmul.f32 0.03125, %v1920_v9 }
 0x8a0   : > { %v1926_v2 = vsub.f32 %v3573_v0, %v1924_v10 }
 0x8a1   : > { %v1923_v11 = vpop.xlane.xlu0 %1922 }
 0x8a2   : > { %v1925_v12 = vmul.f32 0.03125, %v1923_v11  ;;  %v1928_v13 = vmul.f32 %v1926_v2, %v1926_v2 }
 0x8a4   : > { %v1927_v14 = vsub.f32 %v3578_v6, %v1925_v12  ;;  %v1930_v15 = vsel %vm704_vm1, %v1928_v13, 0.0 }
 0x8a5   : > { %1931 = vadd.xlane.f32.xlu0 %v1930_v15 }
 0x8a6   : > { %v1929_v3 = vmul.f32 %v1927_v14, %v1927_v14 }
 0x8a8   : > { %v1933_v16 = vsel %vm704_vm1, %v1929_v3, 0.0 }
 0x8a9   : > { %1934 = vadd.xlane.f32.xlu0 %v1933_v16 }
 0x92e   : > { %v1932_v19 = vpop.xlane.xlu0 %1931 }
 0x92f   : > { %v1936_v20 = vmul.f32 0.03125, %v1932_v19 }
 0x931   : > { %v1938_v21 = vadd.f32 1e-05, %v1936_v20 }
 0x932   : > { %v1935_v22 = vpop.xlane.xlu0 %1934 }
 0x933   : > { %2778 = vrsqrt.f32 %v1938_v21  ;;  %v1937_v23 = vmul.f32 0.03125, %v1935_v22 }
 0x935   : > { %v1939_v24 = vadd.f32 1e-05, %v1937_v23 }
 0x937   : > { %2780 = vrsqrt.f32 %v1939_v24 }
 0x940   : > { %v2779_v25 = vpop.eup %2778 }
 0x941   : > { %v1942_v26 = vmul.f32 %v2779_v25, %v1926_v2 }
 0x943   : > { %v1950_v30 = vmul.f32 %v2409_v27, %v1942_v26 }
 0x944   : > { %v2781_v28 = vpop.eup %2780 }
 0x945   : > { %v1943_v29 = vmul.f32 %v2781_v28, %v1927_v14  ;;  %v1958_v32 = vadd.f32 %v2410_v31, %v1950_v30 }
 0x947   : > { %v1951_v45 = vmul.f32 %v2409_v27, %v1943_v29 }
 0x949   : > { %v1959_v33 = vadd.f32 %v2410_v31, %v1951_v45 }
 0x94b   : > { %v1960_v34 = vpack.c.bf16 %v1959_v33, %v1958_v32 }
 0x94d   : > { %2584 = vmatmul.mubr.msk.bf16.vlgmr.msra.gmra.mxu0 %vm704_vm1, %v1960_v34 }
 0xa0d   : > { %v2014_v39 = vpop.f32.mrf.mxu0 }
 0xa0e   : > { %2037 = vrot.lane.b32.xlu1 %v2014_v39, %s3041_s11  ;;  %v2414_v43 = vmul.f32 -1.442695, %v2014_v39 }
 0xa0f   : > { %v2585_v40 = vpop.f32.mrf.mxu0 }
 0xa10   : > { %2782 = vpow2.f32 %v2414_v43 }
 0xa11   : > { %v2017_v41 = vpop.f32.mrf.mxu0 }
 0xa12   : > { %2039 = vrot.lane.b32.xlu0 %v2017_v41, %s3041_s11  ;;  %v2415_v44 = vmul.f32 -1.442695, %v2017_v41  ;;  %s3706_s11 = sld [smem:[#allocation27_spill]] (!%p2421_p10) }
 0xa13   : > { %v2586_v42 = vpop.f32.mrf.mxu0 }
 0xa14   : > { %2784 = vpow2.f32 %v2415_v44 }
 0xa1d   : > { %v2783_v46 = vpop.eup %2782 }
 0xa1e   : > { %v2027_v48 = vadd.f32 1.0, %v2783_v46 }
 0xa20   : > { %2786 = vrcp.f32 %v2027_v48 }
 0xa21   : > { %v2785_v47 = vpop.eup %2784 }
 0xa22   : > { %v2028_v49 = vadd.f32 1.0, %v2785_v47 }
 0xa24   : > { %2788 = vrcp.f32 %v2028_v49 }
 0xa2d   : > { %v2787_v59 = vpop.eup %2786 }
 0xa2e   : > { %v2033_v52 = vmul.f32 %v2787_v59, %v2014_v39 }
 0xa31   : > { %v2789_v50 = vpop.eup %2788 }
 0xa32   : > { %v2034_v53 = vmul.f32 %v2789_v50, %v2017_v41 }
 0xa80   : > { %v2038_v51 = vpop.permute.xlu1 %2037 }
 0xa81   : > { %v2043_v55 = vmul.f32 %v2038_v51, %v2033_v52 }
 0xa84   : > { %v2040_v54 = vpop.permute.xlu0 %2039 }
 0xa85   : > { %v2044_v56 = vmul.f32 %v2040_v54, %v2034_v53 }
 0xa87   : > { %v2045_v57 = vpack.c.bf16 %v2044_v56, %v2043_v55 }
 0xa89   : > { %2596 = vmatmul.mubr.msk.bf16.vlgmr.msra.gmra.mxu1 %vm2078_vm7, %v2045_v57 }
 0xb49   : > { %v2116_v58 = vpop.f32.mrf.mxu1 }
 0xb4a   : > { %v2123_v60 = vadd.f32 %v2116_v58, %v3573_v0 }
 0xb4b   : > { %v2597_v63 = vpop.f32.mrf.mxu1 }
 0xb4c   : > { %2125 = vst.msk [vmem:[#allocation2] sm:$0xff] %vm704_vm1, %v2123_v60  ;;  %2130 = sbr.rel (%p2421_p10) target bundleno = 3210 (0xc8a), region = 112 }
 0xb4d   : > { %v2119_v61 = vpop.f32.mrf.mxu1 }
 0xb4e   : > { %v2124_v62 = vadd.f32 %v2119_v61, %v3578_v6 }
 0xb4f   : > { %v2598_v1 = vpop.f32.mrf.mxu1 }
 0xb50   : > { %2126 = vst.msk [vmem:[#allocation2 + $0x8] sm:$0xff] %vm704_vm1, %v2124_v62 }
 0xb51   : > { %v2133_v4 = vsel %vm704_vm1, %v2123_v60, 0.0  ;;  %v2136_v5 = vsel %vm704_vm1, %v2124_v62, 0.0  ;;  %v2422_v20 = vld [vmem:[%s3667_s13] ss:$0 sm:$0xff] }
 0xb52   : > { %2134 = vadd.xlane.f32.xlu0 %v2133_v4  ;;  %v2423_v22 = vld [vmem:[%s3706_s11] ss:$0 sm:$0xff] }
 0xb56   : > { %2137 = vadd.xlane.f32.xlu0 %v2136_v5 }
 0xbdb   : > { %v2135_v7 = vpop.xlane.xlu0 %2134 }
 0xbdc   : > { %v2139_v0 = vmul.f32 0.03125, %v2135_v7 }
 0xbde   : > { %v2141_v8 = vsub.f32 %v2123_v60, %v2139_v0 }
 0xbdf   : > { %v2138_v9 = vpop.xlane.xlu0 %2137 }
 0xbe0   : > { %v2140_v10 = vmul.f32 0.03125, %v2138_v9  ;;  %v2143_v2 = vmul.f32 %v2141_v8, %v2141_v8 }
 0xbe2   : > { %v2142_v11 = vsub.f32 %v2124_v62, %v2140_v10  ;;  %v2145_v6 = vsel %vm704_vm1, %v2143_v2, 0.0 }
 0xbe3   : > { %2146 = vadd.xlane.f32.xlu1 %v2145_v6 }
 0xbe4   : > { %v2144_v12 = vmul.f32 %v2142_v11, %v2142_v11 }
 0xbe6   : > { %v2148_v13 = vsel %vm704_vm1, %v2144_v12, 0.0 }
 0xbe7   : > { %2149 = vadd.xlane.f32.xlu1 %v2148_v13 }
 0xc6c   : > { %v2147_v14 = vpop.xlane.xlu1 %2146 }
 0xc6d   : > { %v2151_v15 = vmul.f32 0.03125, %v2147_v14 }
 0xc6f   : > { %v2153_v3 = vadd.f32 1e-05, %v2151_v15 }
 0xc70   : > { %v2150_v16 = vpop.xlane.xlu1 %2149 }
 0xc71   : > { %2790 = vrsqrt.f32 %v2153_v3  ;;  %v2152_v17 = vmul.f32 0.03125, %v2150_v16 }
 0xc73   : > { %v2154_v18 = vadd.f32 1e-05, %v2152_v17 }
 0xc75   : > { %2792 = vrsqrt.f32 %v2154_v18 }
 0xc7e   : > { %v2791_v19 = vpop.eup %2790 }
 0xc7f   : > { %v2157_v21 = vmul.f32 %v2791_v19, %v2141_v8 }
 0xc81   : > { %v2165_v23 = vmul.f32 %v2422_v20, %v2157_v21 }
 0xc82   : > { %v2793_v24 = vpop.eup %2792 }
 0xc83   : > { %v2173_v25 = vadd.f32 %v2423_v22, %v2165_v23  ;;  %v2158_v26 = vmul.f32 %v2793_v24, %v2142_v11 }
 0xc85   : > { %2175 = vst.msk [vmem:[#allocation14] sm:$0xff] %vm704_vm1, %v2173_v25  ;;  %v2166_v27 = vmul.f32 %v2422_v20, %v2158_v26 }
 0xc87   : > { %v2174_v28 = vadd.f32 %v2423_v22, %v2166_v27 }
 0xc89   : > { %2176 = vst.msk [vmem:[#allocation14 + $0x8] sm:$0xff] %vm704_vm1, %v2174_v28 }
 0xc8a PF: > { %p2656_p12 = scmp.eq.s32.totalorder %s3153_s22, 1  ;;  %s3050_s21 = smov [#allocation14]  }
 0xc8b   : > { %s2183_s26 = sshll.u32 %s3050_s21, 4  ;;  %s2184_s26 = int_to_ptr.vmem [resolvable:$true] %s2183_s26 }
 0xc8c   : > { %s2952_s0 = scalar_lea.vmem %s2184_s26, 256  ;;  %p2959_p3 = scmp.lt.s32.totalorder %s2184_s26, %s2184_s26 }
 0xc8d   : > { %p2953_p0 = scmp.ne.s32.totalorder %s2184_s26, %s2952_s0  ;;  %p2960_p7 = scmp.lt.s32.totalorder %s2952_s0, %s2952_s0 }
 0xc8f   : > { %p2954_p2 = pnand %p2953_p0, %p2656_p12  ;;  %p2961_p1 = por %p2960_p7, %p2959_p3 }
 0xc91   : > { %p2955_p13 = pneg %p2954_p2 }
 0xc93   : > { %p2962_p4 = pnand %p2961_p1, %p2955_p13 }
 0xc95   : > { %2965 = shalt.err (!%p2962_p4)
}
 0xc96   : > { %s3051_s23 = smov 128   ;;  %s3707_s4 = sld [smem:[#allocation28_spill]] }
 0xc9c   : > { %2622 = dma.vmem_to_hbm [thread:$0]  (%p2656_p12), %s2184_s26, 256, %s3707_s4, [#allocation5], %s3051_s23, %s3051_s23, %s3047_s18  }
 0xc9d   : > { %3009 = dma.done.wait (%p2656_p12), [#allocation5], 256  }
 0xc9e   : > { %3011 = vsyncadd (%p2656_p12), [#allocation5], 4294967040 }
 0xc9f PF: > { %s3708_s16 = sld [smem:[#allocation20_spill]]  ;;  %p29_p11 = scmp.ge.s32.totalorder %s3242_s28, 4  }
 0xca0   : > { %s3709_s18 = smov %s3018_s19  ;;  %s3710_s19 = smov %s3022_s20 }
 0xca1   : > { %s3712_s21 = smov %s3242_s28  ;;  %31 = sbr.rel (!%p29_p11) target bundleno = 16 (0x10), region = 167 }
 0xca5   : > { %s3711_s20 = smov %s3708_s16 }
 0xca6   :  { %2199 = vsyncpa [#allocation4], 1 }
 0xca7   :  { %2201 = vsyncpa [#allocation4 + $0x1], 1 }
 0xca8   :  { %2202 = vsyncpa [#allocation7], 1 }
 0xca9   :  { %2203 = vsyncpa [#allocation10], 1 }
 0xcaa   :  { %2204 = vsyncpa [#allocation13], 1 }
 0xcab   :  { %2206 = vsyncpa [#allocation13 + $0x1], 1 }
 0xcac   :  { %2207 = vsyncpa [#allocation5], 1 }
 0xcad   :  { %2209 = vsyncpa [#allocation5 + $0x1], 1 }

</bundles_post_ra>
